<compile_context>
chip_gen: v5e
topology: v5e:2x2
jax: 0.10.0
libtpu: 0.0.40
codegen_flags: <defaults>
</compile_context>

<pallas_src>
import functools
import math

import jax
import jax.numpy as jnp
from jax import lax
from jax.experimental import pallas as pl
from jax.experimental.pallas import tpu as pltpu


# ----------------------------------------------------------------------------
# Block-size heuristics
# ----------------------------------------------------------------------------
def _pick_batch_block(batch, seq):
    """Batch rows packed per grid step: aim for Bb*seq >= 256 rows (MXU fill),
    keep the row block 8-aligned, and avoid huge static unrolls."""
    divisors = [d for d in range(1, batch + 1) if batch % d == 0]
    legal = [d for d in divisors if d == batch or (d * seq) % 8 == 0]
    for d in legal:                       # smallest block reaching the target
        if d * seq >= 256:
            return d
    small = [d for d in legal if d * seq <= 1024]
    return small[-1] if small else legal[0]


def _pick_head_group(num_heads, head_dim):
    """Heads per grid step: enough to fill >=128 lanes of the per-group
    projection matmul, but no more (bounds per-step vreg pressure)."""
    target = max(1, 128 // max(head_dim, 1))
    best = 1
    for d in range(1, num_heads + 1):
        if num_heads % d == 0 and d <= target:
            best = d
    return best


def _vmem_limit_bytes():
    """~75% of physical VMEM, capped at 100 MiB (v5e/v6e: 128 MiB phys,
    v7x: 64 MiB phys)."""
    try:
        cap = int(pltpu.get_tpu_info().vmem_capacity_bytes)
    except Exception:
        cap = 64 * 1024 * 1024
    return max(32 * 1024 * 1024, min(100 * 1024 * 1024, cap * 3 // 4))


def _const_spec(block_shape, index_map):
    """Grid-constant input: single-buffer it (saves one VMEM copy); fall back
    to a plain BlockSpec if this JAX does not expose pipeline_mode."""
    try:
        return pl.BlockSpec(block_shape, index_map, pipeline_mode=pl.Buffered(1))
    except Exception:
        return pl.BlockSpec(block_shape, index_map)


# ----------------------------------------------------------------------------
# Kernel
# ----------------------------------------------------------------------------
def _mha_relpos_kernel(xq_ref, xk_ref, xv_ref,
                       wq_ref, bq_ref, wk_ref, bk_ref, wv_ref, bv_ref,
                       wo_ref, bo_ref,
                       out_ref,
                       bias_ref, acc_ref,
                       *, seq_len, batch_block, heads_per_group, head_dim,
                       num_groups, scale):
    """Grid = (batch_blocks, head_groups).

    One step: per-group q/k/v projections for a (Bb*S, D) row slab, per-head
    attention for the heads in this group, and accumulation of this group's
    contribution to the output projection."""
    S, Bb, Hg, Dh = seq_len, batch_block, heads_per_group, head_dim
    g = pl.program_id(1)

    # ---- once per batch block (first head group): bias + accumulator init.
    # Guarded on the *inner* axis so it stays correct when the outer (batch)
    # axis is sharded across TensorCores.
    @pl.when(g == 0)
    def _init():
        row = lax.broadcasted_iota(jnp.int32, (S, S), 0)
        col = lax.broadcasted_iota(jnp.int32, (S, S), 1)
        bias_ref[...] = jnp.abs(row - col).astype(jnp.float32) * (-0.1)
        acc_ref[...] = jnp.zeros_like(acc_ref)

    # ---- per-group projections: (R, D) @ (D, Ng), lane/sublane dense. -----
    xq = xq_ref[...].astype(jnp.bfloat16)          # (R, D)
    xk = xk_ref[...].astype(jnp.bfloat16)
    xv = xv_ref[...].astype(jnp.bfloat16)
    wq, wk, wv, wo = wq_ref[0], wk_ref[0], wv_ref[0], wo_ref[0]

    # Softmax scale folded into q; accumulate in f32.
    q = (jnp.dot(xq, wq, preferred_element_type=jnp.float32) + bq_ref[0]) * scale
    k = jnp.dot(xk, wk, preferred_element_type=jnp.float32) + bk_ref[0]
    v = jnp.dot(xv, wv, preferred_element_type=jnp.float32) + bv_ref[0]
    qb = q.astype(jnp.bfloat16)                    # (R, Ng)
    kb = k.astype(jnp.bfloat16)
    vb = v.astype(jnp.bfloat16)

    rel_bias = bias_ref[...]                       # (S, S) f32

    # ---- attention for every batch row in the slab, every head in group. --
    # Loops are short and static (Bb*S <= ~1024 rows, Hg*Dh <= ~128 lanes).
    for bi in range(Bb):
        r0 = bi * S
        qr = qb[r0:r0 + S, :]
        kr = kb[r0:r0 + S, :]
        vr = vb[r0:r0 + S, :]
        contrib = None                              # (S, D) f32, stays in vregs
        for hh in range(Hg):
            c0 = hh * Dh
            qh = qr[:, c0:c0 + Dh]                  # (S, Dh) bf16
            kh = kr[:, c0:c0 + Dh]
            vh = vr[:, c0:c0 + Dh]

            # scores = q @ k^T (no in-kernel transpose of k).
            s = lax.dot_general(qh, kh, (((1,), (1,)), ((), ())),
                                preferred_element_type=jnp.float32)  # (S, S)
            s = s + rel_bias

            # Numerically stable softmax; reciprocal on the EUP.
            s = s - jnp.max(s, axis=-1, keepdims=True)
            p = jnp.exp(s)
            inv = pl.reciprocal(jnp.sum(p, axis=-1, keepdims=True), approx=True)
            attn = (p * inv).astype(jnp.bfloat16)

            # Per-head context (stays in vregs) folded straight into the
            # out-projection: ctx_h @ Wo_rows_h  -> full-width (S, D) slab.
            ctx = jnp.dot(attn, vh, preferred_element_type=jnp.float32)
            part = jnp.dot(ctx.astype(jnp.bfloat16), wo[c0:c0 + Dh, :],
                           preferred_element_type=jnp.float32)        # (S, D)
            contrib = part if contrib is None else contrib + part

        # Lane-dense (S, D) accumulator update (no Dh-wide masked stores).
        acc_ref[r0:r0 + S, :] += contrib

    # ---- last head group: add out-proj bias and emit the output slab. -----
    @pl.when(g == num_groups - 1)
    def _finalize():
        out_ref[...] = acc_ref[...] + bo_ref[...]


# ----------------------------------------------------------------------------
# Wrapper
# ----------------------------------------------------------------------------
def mha_relpos_forward(query, key, value, params, num_heads):
    B, S, D = query.shape
    assert D % num_heads == 0
    Dh = D // num_heads
    scale = Dh ** (-0.5)

    Bb = _pick_batch_block(B, S)          # batch rows per grid step
    Hg = _pick_head_group(num_heads, Dh)  # heads per grid step
    G = num_heads // Hg                   # head groups (inner grid axis)
    Ng = Hg * Dh                          # projection width per group
    R = Bb * S                            # rows per grid step

    # Host-side prep: transpose once, split per head-group, cast to bf16.
    def group_w(w):                       # torch (out, in) -> (G, in, Ng)
        return w.T.reshape(D, G, Ng).transpose(1, 0, 2).astype(jnp.bfloat16)

    def group_b(b):                       # (out,) -> (G, 1, Ng)
        return b.reshape(G, 1, Ng).astype(jnp.float32)

    wq_g, wk_g, wv_g = (group_w(params[n]) for n in ("wq", "wk", "wv"))
    bq_g, bk_g, bv_g = (group_b(params[n]) for n in ("bq", "bk", "bv"))
    wo_g = params["wo"].T.reshape(G, Ng, D).astype(jnp.bfloat16)  # rows/group
    bo2 = params["bo"].reshape(1, D).astype(jnp.float32)

    # Flatten (B, S, D) -> (B*S, D) on the host (free, contiguous reshape) so
    # kernel blocks are clean lane/sublane-dense 2-D row slabs.
    xq = query.reshape(B * S, D)
    xk = key.reshape(B * S, D)
    xv = value.reshape(B * S, D)

    kernel = functools.partial(
        _mha_relpos_kernel, seq_len=S, batch_block=Bb, heads_per_group=Hg,
        head_dim=Dh, num_groups=G, scale=scale)

    act_spec = pl.BlockSpec((R, D), lambda i, g: (i, 0))
    if G == 1:
        # All weights grid-constant -> single-buffer them.
        w_spec = _const_spec((1, D, Ng), lambda i, g: (0, 0, 0))
        b_spec = _const_spec((1, 1, Ng), lambda i, g: (0, 0, 0))
        wo_spec = _const_spec((1, Ng, D), lambda i, g: (0, 0, 0))
    else:
        w_spec = pl.BlockSpec((1, D, Ng), lambda i, g: (g, 0, 0))
        b_spec = pl.BlockSpec((1, 1, Ng), lambda i, g: (g, 0, 0))
        wo_spec = pl.BlockSpec((1, Ng, D), lambda i, g: (g, 0, 0))
    bo_spec = _const_spec((1, D), lambda i, g: (0, 0))

    # Advisory cost estimate: 8*S*D^2 projection flops + 4*S^2*D attention
    # flops per batch row; one exp per score element.
    flops = int(B * (8 * S * D * D + 4 * S * S * D))
    transcendentals = int(B * num_heads * S * S)
    bytes_accessed = int(4 * 4 * B * S * D + 2 * 4 * D * D + 4 * 4 * D)
    cost = pl.CostEstimate(flops=flops, transcendentals=transcendentals,
                           bytes_accessed=bytes_accessed)

    out2d = pl.pallas_call(
        kernel,
        out_shape=jax.ShapeDtypeStruct((B * S, D), jnp.float32),
        grid_spec=pltpu.PrefetchScalarGridSpec(
            num_scalar_prefetch=0,
            grid=(B // Bb, G),
            in_specs=[act_spec, act_spec, act_spec,
                      w_spec, b_spec,       # Wq group, bq group
                      w_spec, b_spec,       # Wk group, bk group
                      w_spec, b_spec,       # Wv group, bv group
                      wo_spec, bo_spec],    # Wo group rows, bo
            out_specs=pl.BlockSpec((R, D), lambda i, g: (i, 0)),
            scratch_shapes=[pltpu.VMEM((S, S), jnp.float32),   # rel_bias
                            pltpu.VMEM((R, D), jnp.float32)],  # out accumulator
        ),
        compiler_params=pltpu.CompilerParams(
            dimension_semantics=("parallel", "arbitrary"),
            vmem_limit_bytes=_vmem_limit_bytes(),
        ),
        cost_estimate=cost,
    )(xq, xk, xv, wq_g, bq_g, wk_g, bk_g, wv_g, bv_g, wo_g, bo2)

    return out2d.reshape(B, S, D)


# ----------------------------------------------------------------------------
# Pure-JAX reference (mirrors the PyTorch forward, eval mode) + init
# ----------------------------------------------------------------------------
def mha_relpos_reference(query, key, value, params, num_heads):
    B, S, D = query.shape
    Dh = D // num_heads
    scale = Dh ** (-0.5)

    def lin(x, w, b):
        return x @ w.T + b

    q = lin(query, params["wq"], params["bq"]).reshape(B, S, num_heads, Dh).transpose(0, 2, 1, 3)
    k = lin(key, params["wk"], params["bk"]).reshape(B, S, num_heads, Dh).transpose(0, 2, 1, 3)
    v = lin(value, params["wv"], params["bv"]).reshape(B, S, num_heads, Dh).transpose(0, 2, 1, 3)

    scores = jnp.einsum("bhqd,bhkd->bhqk", q, k) * scale
    pos = jnp.arange(S)
    rel_bias = (-jnp.abs(pos[:, None] - pos[None, :]).astype(jnp.float32)) * 0.1
    scores = scores + rel_bias[None, None]
    attn = jax.nn.softmax(scores, axis=-1)
    out = jnp.einsum("bhqk,bhkd->bhqd", attn, v)
    out = out.transpose(0, 2, 1, 3).reshape(B, S, D)
    return lin(out, params["wo"], params["bo"])


def init_params(key, d_model, max_seq_len=1000):
    ks = jax.random.split(key, 10)
    bound = 1.0 / math.sqrt(d_model)

    def lin_init(kw, kb):
        w = jax.random.uniform(kw, (d_model, d_model), jnp.float32, -bound, bound)
        b = jax.random.uniform(kb, (d_model,), jnp.float32, -bound, bound)
        return w, b

    wq, bq = lin_init(ks[0], ks[1])
    wk, bk = lin_init(ks[2], ks[3])
    wv, bv = lin_init(ks[4], ks[5])
    wo, bo = lin_init(ks[6], ks[7])
    # Parameters below exist in the PyTorch module but are unused in forward().
    rel_pos_embedding = jax.random.normal(ks[8], (2 * max_seq_len - 1, d_model), jnp.float32)
    w_rp, b_rp = lin_init(ks[9], ks[9])
    return {
        "wq": wq, "bq": bq, "wk": wk, "bk": bk, "wv": wv, "bv": bv,
        "wo": wo, "bo": bo,
        "rel_pos_embedding": rel_pos_embedding, "w_rel_pos": w_rp, "b_rel_pos": b_rp,
    }


if __name__ == "__main__":
    # Smoke-test shapes only (D=32, Dh=8): lane-masked at these widths; pad
    # D/Dh to multiples of 128 before drawing performance conclusions.
    B, S, D, H = 2, 8, 32, 4

    root = jax.random.PRNGKey(0)
    k_params, k_q, k_k, k_v = jax.random.split(root, 4)
    params = init_params(k_params, D, max_seq_len=64)

    query = jax.random.normal(k_q, (B, S, D), jnp.float32)
    key = jax.random.normal(k_k, (B, S, D), jnp.float32)
    value = jax.random.normal(k_v, (B, S, D), jnp.float32)

    out = mha_relpos_forward(query, key, value, params, H)
    out = jax.block_until_ready(out)

    ref = mha_relpos_reference(query, key, value, params, H)
    assert out.shape == (B, S, D)
    # bf16 MXU operands (f32 accumulation) -> tolerance widened vs f32 ref.
    assert jnp.allclose(out, ref, rtol=5e-2, atol=5e-2), "mismatch vs pure-JAX reference"

    print("KERNEL_OK")
</pallas_src>

<mosaic_0001>
module attributes {stable_mosaic.version = 11 : i64} {
  func.func @_mha_relpos_kernel(%arg0: i32, %arg1: i32, %arg2: memref<16x32xf32, #tpu.memory_space<vmem>>, %arg3: memref<16x32xf32, #tpu.memory_space<vmem>>, %arg4: memref<16x32xf32, #tpu.memory_space<vmem>>, %arg5: memref<1x32x32xbf16, #tpu.memory_space<vmem>>, %arg6: memref<1x1x32xf32, #tpu.memory_space<vmem>>, %arg7: memref<1x32x32xbf16, #tpu.memory_space<vmem>>, %arg8: memref<1x1x32xf32, #tpu.memory_space<vmem>>, %arg9: memref<1x32x32xbf16, #tpu.memory_space<vmem>>, %arg10: memref<1x1x32xf32, #tpu.memory_space<vmem>>, %arg11: memref<1x32x32xbf16, #tpu.memory_space<vmem>>, %arg12: memref<1x32xf32, #tpu.memory_space<vmem>>, %arg13: memref<16x32xf32, #tpu.memory_space<vmem>>, %arg14: memref<8x8xf32, #tpu.memory_space<vmem>>, %arg15: memref<16x32xf32, #tpu.memory_space<vmem>>) attributes {dimension_semantics = [#tpu.dimension_semantics<parallel>, #tpu.dimension_semantics<arbitrary>], iteration_bounds = array<i64: 1, 1>, scalar_prefetch = 0 : i64, scratch_operands = 2 : i64, tpu.core_type = #tpu.core_type<tc>, window_params = [{transform_indices = @transform_0, window_bounds = array<i64: 16, 32>}, {transform_indices = @transform_1, window_bounds = array<i64: 16, 32>}, {transform_indices = @transform_2, window_bounds = array<i64: 16, 32>}, {pipeline_mode = #tpu.pipeline_mode<synchronous>, transform_indices = @transform_3, window_bounds = array<i64: 1, 32, 32>}, {pipeline_mode = #tpu.pipeline_mode<synchronous>, transform_indices = @transform_4, window_bounds = array<i64: 1, 1, 32>}, {pipeline_mode = #tpu.pipeline_mode<synchronous>, transform_indices = @transform_5, window_bounds = array<i64: 1, 32, 32>}, {pipeline_mode = #tpu.pipeline_mode<synchronous>, transform_indices = @transform_6, window_bounds = array<i64: 1, 1, 32>}, {pipeline_mode = #tpu.pipeline_mode<synchronous>, transform_indices = @transform_7, window_bounds = array<i64: 1, 32, 32>}, {pipeline_mode = #tpu.pipeline_mode<synchronous>, transform_indices = @transform_8, window_bounds = array<i64: 1, 1, 32>}, {pipeline_mode = #tpu.pipeline_mode<synchronous>, transform_indices = @transform_9, window_bounds = array<i64: 1, 32, 32>}, {pipeline_mode = #tpu.pipeline_mode<synchronous>, transform_indices = @transform_10, window_bounds = array<i64: 1, 32>}, {transform_indices = @transform_11, window_bounds = array<i64: 16, 32>}]} {
    %c0_i32 = arith.constant 0 : i32
    %0 = arith.cmpi eq, %arg1, %c0_i32 : i32
    %1 = arith.extui %0 : i1 to i32
    %c0_i32_0 = arith.constant 0 : i32
    %2 = arith.cmpi ne, %1, %c0_i32_0 : i32
    scf.if %2 {
      %219 = tpu.iota {dimensions = array<i32: 0>} : vector<8x8xi32>
      %220 = tpu.iota {dimensions = array<i32: 1>} : vector<8x8xi32>
      %221 = arith.subi %219, %220 : vector<8x8xi32>
      %222 = math.absi %221 : vector<8x8xi32>
      %223 = arith.sitofp %222 : vector<8x8xi32> to vector<8x8xf32>
      %cst_81 = arith.constant -1.000000e-01 : f32
      %224 = vector.broadcast %cst_81 : f32 to vector<8x8xf32>
      %225 = arith.mulf %223, %224 : vector<8x8xf32>
      %c0_82 = arith.constant 0 : index
      %c0_83 = arith.constant 0 : index
      %226 = vector.load %arg14[%c0_82, %c0_83] : memref<8x8xf32, #tpu.memory_space<vmem>>, vector<8x8xf32>
      tpu.vector_store %arg14[%c0_82, %c0_83], %225 {strides = array<i32>} : memref<8x8xf32, #tpu.memory_space<vmem>>, vector<8x8xf32>,
      %cst_84 = arith.constant 0.000000e+00 : f32
      %227 = vector.broadcast %cst_84 : f32 to vector<16x32xf32>
      %c0_85 = arith.constant 0 : index
      %c0_86 = arith.constant 0 : index
      %228 = vector.load %arg15[%c0_85, %c0_86] : memref<16x32xf32, #tpu.memory_space<vmem>>, vector<16x32xf32>
      tpu.vector_store %arg15[%c0_85, %c0_86], %227 {strides = array<i32>} : memref<16x32xf32, #tpu.memory_space<vmem>>, vector<16x32xf32>,
    } else {
    }
    %c0 = arith.constant 0 : index
    %c0_1 = arith.constant 0 : index
    %3 = vector.load %arg2[%c0, %c0_1] : memref<16x32xf32, #tpu.memory_space<vmem>>, vector<16x32xf32>
    %4 = arith.truncf %3 : vector<16x32xf32> to vector<16x32xbf16>
    %c0_2 = arith.constant 0 : index
    %c0_3 = arith.constant 0 : index
    %5 = vector.load %arg3[%c0_2, %c0_3] : memref<16x32xf32, #tpu.memory_space<vmem>>, vector<16x32xf32>
    %6 = arith.truncf %5 : vector<16x32xf32> to vector<16x32xbf16>
    %c0_4 = arith.constant 0 : index
    %c0_5 = arith.constant 0 : index
    %7 = vector.load %arg4[%c0_4, %c0_5] : memref<16x32xf32, #tpu.memory_space<vmem>>, vector<16x32xf32>
    %8 = arith.truncf %7 : vector<16x32xf32> to vector<16x32xbf16>
    %c0_6 = arith.constant 0 : index
    %c0_7 = arith.constant 0 : index
    %c0_8 = arith.constant 0 : index
    %9 = vector.load %arg5[%c0_6, %c0_7, %c0_8] : memref<1x32x32xbf16, #tpu.memory_space<vmem>>, vector<1x32x32xbf16>
    %10 = vector.shape_cast %9 : vector<1x32x32xbf16> to vector<32x32xbf16>
    %c0_9 = arith.constant 0 : index
    %c0_10 = arith.constant 0 : index
    %c0_11 = arith.constant 0 : index
    %11 = vector.load %arg7[%c0_9, %c0_10, %c0_11] : memref<1x32x32xbf16, #tpu.memory_space<vmem>>, vector<1x32x32xbf16>
    %12 = vector.shape_cast %11 : vector<1x32x32xbf16> to vector<32x32xbf16>
    %c0_12 = arith.constant 0 : index
    %c0_13 = arith.constant 0 : index
    %c0_14 = arith.constant 0 : index
    %13 = vector.load %arg9[%c0_12, %c0_13, %c0_14] : memref<1x32x32xbf16, #tpu.memory_space<vmem>>, vector<1x32x32xbf16>
    %14 = vector.shape_cast %13 : vector<1x32x32xbf16> to vector<32x32xbf16>
    %c0_15 = arith.constant 0 : index
    %c0_16 = arith.constant 0 : index
    %c0_17 = arith.constant 0 : index
    %15 = vector.load %arg11[%c0_15, %c0_16, %c0_17] : memref<1x32x32xbf16, #tpu.memory_space<vmem>>, vector<1x32x32xbf16>
    %16 = vector.shape_cast %15 : vector<1x32x32xbf16> to vector<32x32xbf16>
    %cst = arith.constant dense<0.000000e+00> : vector<16x32xf32>
    %17 = tpu.matmul %4, %10, %cst {dimension_numbers = #tpu.dot_dimension_numbers<[1], [0], [0], [1], [0, 0, 1, 1], [], []>} : vector<16x32xbf16>, vector<32x32xbf16>, vector<16x32xf32> -> vector<16x32xf32>
    %c0_18 = arith.constant 0 : index
    %c0_19 = arith.constant 0 : index
    %c0_20 = arith.constant 0 : index
    %18 = vector.load %arg6[%c0_18, %c0_19, %c0_20] : memref<1x1x32xf32, #tpu.memory_space<vmem>>, vector<1x1x32xf32>
    %19 = vector.shape_cast %18 : vector<1x1x32xf32> to vector<1x32xf32>
    %20 = vector.broadcast %19 : vector<1x32xf32> to vector<16x32xf32>
    %21 = arith.addf %17, %20 : vector<16x32xf32>
    %cst_21 = arith.constant 0.353553385 : f32
    %22 = vector.broadcast %cst_21 : f32 to vector<16x32xf32>
    %23 = arith.mulf %21, %22 : vector<16x32xf32>
    %cst_22 = arith.constant dense<0.000000e+00> : vector<16x32xf32>
    %24 = tpu.matmul %6, %12, %cst_22 {dimension_numbers = #tpu.dot_dimension_numbers<[1], [0], [0], [1], [0, 0, 1, 1], [], []>} : vector<16x32xbf16>, vector<32x32xbf16>, vector<16x32xf32> -> vector<16x32xf32>
    %c0_23 = arith.constant 0 : index
    %c0_24 = arith.constant 0 : index
    %c0_25 = arith.constant 0 : index
    %25 = vector.load %arg8[%c0_23, %c0_24, %c0_25] : memref<1x1x32xf32, #tpu.memory_space<vmem>>, vector<1x1x32xf32>
    %26 = vector.shape_cast %25 : vector<1x1x32xf32> to vector<1x32xf32>
    %27 = vector.broadcast %26 : vector<1x32xf32> to vector<16x32xf32>
    %28 = arith.addf %24, %27 : vector<16x32xf32>
    %cst_26 = arith.constant dense<0.000000e+00> : vector<16x32xf32>
    %29 = tpu.matmul %8, %14, %cst_26 {dimension_numbers = #tpu.dot_dimension_numbers<[1], [0], [0], [1], [0, 0, 1, 1], [], []>} : vector<16x32xbf16>, vector<32x32xbf16>, vector<16x32xf32> -> vector<16x32xf32>
    %c0_27 = arith.constant 0 : index
    %c0_28 = arith.constant 0 : index
    %c0_29 = arith.constant 0 : index
    %30 = vector.load %arg10[%c0_27, %c0_28, %c0_29] : memref<1x1x32xf32, #tpu.memory_space<vmem>>, vector<1x1x32xf32>
    %31 = vector.shape_cast %30 : vector<1x1x32xf32> to vector<1x32xf32>
    %32 = vector.broadcast %31 : vector<1x32xf32> to vector<16x32xf32>
    %33 = arith.addf %29, %32 : vector<16x32xf32>
    %34 = arith.truncf %23 : vector<16x32xf32> to vector<16x32xbf16>
    %35 = arith.truncf %28 : vector<16x32xf32> to vector<16x32xbf16>
    %36 = arith.truncf %33 : vector<16x32xf32> to vector<16x32xbf16>
    %c0_30 = arith.constant 0 : index
    %c0_31 = arith.constant 0 : index
    %37 = vector.load %arg14[%c0_30, %c0_31] : memref<8x8xf32, #tpu.memory_space<vmem>>, vector<8x8xf32>
    %38 = vector.extract_strided_slice %34 {offsets = [0, 0], sizes = [8, 32], strides = [1, 1]} : vector<16x32xbf16> to vector<8x32xbf16>
    %39 = vector.extract_strided_slice %35 {offsets = [0, 0], sizes = [8, 32], strides = [1, 1]} : vector<16x32xbf16> to vector<8x32xbf16>
    %40 = vector.extract_strided_slice %36 {offsets = [0, 0], sizes = [8, 32], strides = [1, 1]} : vector<16x32xbf16> to vector<8x32xbf16>
    %41 = vector.extract_strided_slice %38 {offsets = [0, 0], sizes = [8, 8], strides = [1, 1]} : vector<8x32xbf16> to vector<8x8xbf16>
    %42 = vector.extract_strided_slice %39 {offsets = [0, 0], sizes = [8, 8], strides = [1, 1]} : vector<8x32xbf16> to vector<8x8xbf16>
    %43 = vector.extract_strided_slice %40 {offsets = [0, 0], sizes = [8, 8], strides = [1, 1]} : vector<8x32xbf16> to vector<8x8xbf16>
    %cst_32 = arith.constant dense<0.000000e+00> : vector<8x8xf32>
    %44 = tpu.matmul %41, %42, %cst_32 {dimension_numbers = #tpu.dot_dimension_numbers<[1], [1], [0], [0], [0, 0, 1, 0], [], []>} : vector<8x8xbf16>, vector<8x8xbf16>, vector<8x8xf32> -> vector<8x8xf32>
    %45 = arith.addf %44, %37 : vector<8x8xf32>
    %cst_33 = arith.constant dense<0xFF800000> : vector<8xf32>
    %46 = vector.multi_reduction <maximumf>, %45, %cst_33 [1] : vector<8x8xf32> to vector<8xf32>
    %47 = vector.shape_cast %46 : vector<8xf32> to vector<8x1xf32>
    %48 = vector.broadcast %47 : vector<8x1xf32> to vector<8x8xf32>
    %49 = arith.subf %45, %48 : vector<8x8xf32>
    %50 = math.exp %49 : vector<8x8xf32>
    %cst_34 = arith.constant dense<0.000000e+00> : vector<8xf32>
    %51 = vector.multi_reduction <add>, %50, %cst_34 [1] : vector<8x8xf32> to vector<8xf32>
    %52 = vector.shape_cast %51 : vector<8xf32> to vector<8x1xf32>
    %53 = tpu.reciprocal %52 {approx = true} : vector<8x1xf32> -> vector<8x1xf32>
    %54 = vector.broadcast %53 : vector<8x1xf32> to vector<8x8xf32>
    %55 = arith.mulf %50, %54 : vector<8x8xf32>
    %56 = arith.truncf %55 : vector<8x8xf32> to vector<8x8xbf16>
    %cst_35 = arith.constant dense<0.000000e+00> : vector<8x8xf32>
    %57 = tpu.matmul %56, %43, %cst_35 {dimension_numbers = #tpu.dot_dimension_numbers<[1], [0], [0], [1], [0, 0, 1, 1], [], []>} : vector<8x8xbf16>, vector<8x8xbf16>, vector<8x8xf32> -> vector<8x8xf32>
    %58 = arith.truncf %57 : vector<8x8xf32> to vector<8x8xbf16>
    %59 = vector.extract_strided_slice %16 {offsets = [0, 0], sizes = [8, 32], strides = [1, 1]} : vector<32x32xbf16> to vector<8x32xbf16>
    %cst_36 = arith.constant dense<0.000000e+00> : vector<8x32xf32>
    %60 = tpu.matmul %58, %59, %cst_36 {dimension_numbers = #tpu.dot_dimension_numbers<[1], [0], [0], [1], [0, 0, 1, 1], [], []>} : vector<8x8xbf16>, vector<8x32xbf16>, vector<8x32xf32> -> vector<8x32xf32>
    %61 = vector.extract_strided_slice %38 {offsets = [0, 8], sizes = [8, 8], strides = [1, 1]} : vector<8x32xbf16> to vector<8x8xbf16>
    %62 = vector.extract_strided_slice %39 {offsets = [0, 8], sizes = [8, 8], strides = [1, 1]} : vector<8x32xbf16> to vector<8x8xbf16>
    %63 = vector.extract_strided_slice %40 {offsets = [0, 8], sizes = [8, 8], strides = [1, 1]} : vector<8x32xbf16> to vector<8x8xbf16>
    %cst_37 = arith.constant dense<0.000000e+00> : vector<8x8xf32>
    %64 = tpu.matmul %61, %62, %cst_37 {dimension_numbers = #tpu.dot_dimension_numbers<[1], [1], [0], [0], [0, 0, 1, 0], [], []>} : vector<8x8xbf16>, vector<8x8xbf16>, vector<8x8xf32> -> vector<8x8xf32>
    %65 = arith.addf %64, %37 : vector<8x8xf32>
    %cst_38 = arith.constant dense<0xFF800000> : vector<8xf32>
    %66 = vector.multi_reduction <maximumf>, %65, %cst_38 [1] : vector<8x8xf32> to vector<8xf32>
    %67 = vector.shape_cast %66 : vector<8xf32> to vector<8x1xf32>
    %68 = vector.broadcast %67 : vector<8x1xf32> to vector<8x8xf32>
    %69 = arith.subf %65, %68 : vector<8x8xf32>
    %70 = math.exp %69 : vector<8x8xf32>
    %cst_39 = arith.constant dense<0.000000e+00> : vector<8xf32>
    %71 = vector.multi_reduction <add>, %70, %cst_39 [1] : vector<8x8xf32> to vector<8xf32>
    %72 = vector.shape_cast %71 : vector<8xf32> to vector<8x1xf32>
    %73 = tpu.reciprocal %72 {approx = true} : vector<8x1xf32> -> vector<8x1xf32>
    %74 = vector.broadcast %73 : vector<8x1xf32> to vector<8x8xf32>
    %75 = arith.mulf %70, %74 : vector<8x8xf32>
    %76 = arith.truncf %75 : vector<8x8xf32> to vector<8x8xbf16>
    %cst_40 = arith.constant dense<0.000000e+00> : vector<8x8xf32>
    %77 = tpu.matmul %76, %63, %cst_40 {dimension_numbers = #tpu.dot_dimension_numbers<[1], [0], [0], [1], [0, 0, 1, 1], [], []>} : vector<8x8xbf16>, vector<8x8xbf16>, vector<8x8xf32> -> vector<8x8xf32>
    %78 = arith.truncf %77 : vector<8x8xf32> to vector<8x8xbf16>
    %79 = vector.extract_strided_slice %16 {offsets = [8, 0], sizes = [8, 32], strides = [1, 1]} : vector<32x32xbf16> to vector<8x32xbf16>
    %cst_41 = arith.constant dense<0.000000e+00> : vector<8x32xf32>
    %80 = tpu.matmul %78, %79, %cst_41 {dimension_numbers = #tpu.dot_dimension_numbers<[1], [0], [0], [1], [0, 0, 1, 1], [], []>} : vector<8x8xbf16>, vector<8x32xbf16>, vector<8x32xf32> -> vector<8x32xf32>
    %81 = arith.addf %60, %80 : vector<8x32xf32>
    %82 = vector.extract_strided_slice %38 {offsets = [0, 16], sizes = [8, 8], strides = [1, 1]} : vector<8x32xbf16> to vector<8x8xbf16>
    %83 = vector.extract_strided_slice %39 {offsets = [0, 16], sizes = [8, 8], strides = [1, 1]} : vector<8x32xbf16> to vector<8x8xbf16>
    %84 = vector.extract_strided_slice %40 {offsets = [0, 16], sizes = [8, 8], strides = [1, 1]} : vector<8x32xbf16> to vector<8x8xbf16>
    %cst_42 = arith.constant dense<0.000000e+00> : vector<8x8xf32>
    %85 = tpu.matmul %82, %83, %cst_42 {dimension_numbers = #tpu.dot_dimension_numbers<[1], [1], [0], [0], [0, 0, 1, 0], [], []>} : vector<8x8xbf16>, vector<8x8xbf16>, vector<8x8xf32> -> vector<8x8xf32>
    %86 = arith.addf %85, %37 : vector<8x8xf32>
    %cst_43 = arith.constant dense<0xFF800000> : vector<8xf32>
    %87 = vector.multi_reduction <maximumf>, %86, %cst_43 [1] : vector<8x8xf32> to vector<8xf32>
    %88 = vector.shape_cast %87 : vector<8xf32> to vector<8x1xf32>
    %89 = vector.broadcast %88 : vector<8x1xf32> to vector<8x8xf32>
    %90 = arith.subf %86, %89 : vector<8x8xf32>
    %91 = math.exp %90 : vector<8x8xf32>
    %cst_44 = arith.constant dense<0.000000e+00> : vector<8xf32>
    %92 = vector.multi_reduction <add>, %91, %cst_44 [1] : vector<8x8xf32> to vector<8xf32>
    %93 = vector.shape_cast %92 : vector<8xf32> to vector<8x1xf32>
    %94 = tpu.reciprocal %93 {approx = true} : vector<8x1xf32> -> vector<8x1xf32>
    %95 = vector.broadcast %94 : vector<8x1xf32> to vector<8x8xf32>
    %96 = arith.mulf %91, %95 : vector<8x8xf32>
    %97 = arith.truncf %96 : vector<8x8xf32> to vector<8x8xbf16>
    %cst_45 = arith.constant dense<0.000000e+00> : vector<8x8xf32>
    %98 = tpu.matmul %97, %84, %cst_45 {dimension_numbers = #tpu.dot_dimension_numbers<[1], [0], [0], [1], [0, 0, 1, 1], [], []>} : vector<8x8xbf16>, vector<8x8xbf16>, vector<8x8xf32> -> vector<8x8xf32>
    %99 = arith.truncf %98 : vector<8x8xf32> to vector<8x8xbf16>
    %100 = vector.extract_strided_slice %16 {offsets = [16, 0], sizes = [8, 32], strides = [1, 1]} : vector<32x32xbf16> to vector<8x32xbf16>
    %cst_46 = arith.constant dense<0.000000e+00> : vector<8x32xf32>
    %101 = tpu.matmul %99, %100, %cst_46 {dimension_numbers = #tpu.dot_dimension_numbers<[1], [0], [0], [1], [0, 0, 1, 1], [], []>} : vector<8x8xbf16>, vector<8x32xbf16>, vector<8x32xf32> -> vector<8x32xf32>
    %102 = arith.addf %81, %101 : vector<8x32xf32>
    %103 = vector.extract_strided_slice %38 {offsets = [0, 24], sizes = [8, 8], strides = [1, 1]} : vector<8x32xbf16> to vector<8x8xbf16>
    %104 = vector.extract_strided_slice %39 {offsets = [0, 24], sizes = [8, 8], strides = [1, 1]} : vector<8x32xbf16> to vector<8x8xbf16>
    %105 = vector.extract_strided_slice %40 {offsets = [0, 24], sizes = [8, 8], strides = [1, 1]} : vector<8x32xbf16> to vector<8x8xbf16>
    %cst_47 = arith.constant dense<0.000000e+00> : vector<8x8xf32>
    %106 = tpu.matmul %103, %104, %cst_47 {dimension_numbers = #tpu.dot_dimension_numbers<[1], [1], [0], [0], [0, 0, 1, 0], [], []>} : vector<8x8xbf16>, vector<8x8xbf16>, vector<8x8xf32> -> vector<8x8xf32>
    %107 = arith.addf %106, %37 : vector<8x8xf32>
    %cst_48 = arith.constant dense<0xFF800000> : vector<8xf32>
    %108 = vector.multi_reduction <maximumf>, %107, %cst_48 [1] : vector<8x8xf32> to vector<8xf32>
    %109 = vector.shape_cast %108 : vector<8xf32> to vector<8x1xf32>
    %110 = vector.broadcast %109 : vector<8x1xf32> to vector<8x8xf32>
    %111 = arith.subf %107, %110 : vector<8x8xf32>
    %112 = math.exp %111 : vector<8x8xf32>
    %cst_49 = arith.constant dense<0.000000e+00> : vector<8xf32>
    %113 = vector.multi_reduction <add>, %112, %cst_49 [1] : vector<8x8xf32> to vector<8xf32>
    %114 = vector.shape_cast %113 : vector<8xf32> to vector<8x1xf32>
    %115 = tpu.reciprocal %114 {approx = true} : vector<8x1xf32> -> vector<8x1xf32>
    %116 = vector.broadcast %115 : vector<8x1xf32> to vector<8x8xf32>
    %117 = arith.mulf %112, %116 : vector<8x8xf32>
    %118 = arith.truncf %117 : vector<8x8xf32> to vector<8x8xbf16>
    %cst_50 = arith.constant dense<0.000000e+00> : vector<8x8xf32>
    %119 = tpu.matmul %118, %105, %cst_50 {dimension_numbers = #tpu.dot_dimension_numbers<[1], [0], [0], [1], [0, 0, 1, 1], [], []>} : vector<8x8xbf16>, vector<8x8xbf16>, vector<8x8xf32> -> vector<8x8xf32>
    %120 = arith.truncf %119 : vector<8x8xf32> to vector<8x8xbf16>
    %121 = vector.extract_strided_slice %16 {offsets = [24, 0], sizes = [8, 32], strides = [1, 1]} : vector<32x32xbf16> to vector<8x32xbf16>
    %cst_51 = arith.constant dense<0.000000e+00> : vector<8x32xf32>
    %122 = tpu.matmul %120, %121, %cst_51 {dimension_numbers = #tpu.dot_dimension_numbers<[1], [0], [0], [1], [0, 0, 1, 1], [], []>} : vector<8x8xbf16>, vector<8x32xbf16>, vector<8x32xf32> -> vector<8x32xf32>
    %123 = arith.addf %102, %122 : vector<8x32xf32>
    %c0_52 = arith.constant 0 : index
    %c0_53 = arith.constant 0 : index
    %124 = vector.load %arg15[%c0_52, %c0_53] : memref<16x32xf32, #tpu.memory_space<vmem>>, vector<8x32xf32>
    %125 = arith.addf %124, %123 : vector<8x32xf32>
    %c0_54 = arith.constant 0 : index
    %c0_55 = arith.constant 0 : index
    %126 = vector.load %arg15[%c0_54, %c0_55] : memref<16x32xf32, #tpu.memory_space<vmem>>, vector<8x32xf32>
    tpu.vector_store %arg15[%c0_54, %c0_55], %125 {strides = array<i32>} : memref<16x32xf32, #tpu.memory_space<vmem>>, vector<8x32xf32>,
    %127 = vector.extract_strided_slice %34 {offsets = [8, 0], sizes = [8, 32], strides = [1, 1]} : vector<16x32xbf16> to vector<8x32xbf16>
    %128 = vector.extract_strided_slice %35 {offsets = [8, 0], sizes = [8, 32], strides = [1, 1]} : vector<16x32xbf16> to vector<8x32xbf16>
    %129 = vector.extract_strided_slice %36 {offsets = [8, 0], sizes = [8, 32], strides = [1, 1]} : vector<16x32xbf16> to vector<8x32xbf16>
    %130 = vector.extract_strided_slice %127 {offsets = [0, 0], sizes = [8, 8], strides = [1, 1]} : vector<8x32xbf16> to vector<8x8xbf16>
    %131 = vector.extract_strided_slice %128 {offsets = [0, 0], sizes = [8, 8], strides = [1, 1]} : vector<8x32xbf16> to vector<8x8xbf16>
    %132 = vector.extract_strided_slice %129 {offsets = [0, 0], sizes = [8, 8], strides = [1, 1]} : vector<8x32xbf16> to vector<8x8xbf16>
    %cst_56 = arith.constant dense<0.000000e+00> : vector<8x8xf32>
    %133 = tpu.matmul %130, %131, %cst_56 {dimension_numbers = #tpu.dot_dimension_numbers<[1], [1], [0], [0], [0, 0, 1, 0], [], []>} : vector<8x8xbf16>, vector<8x8xbf16>, vector<8x8xf32> -> vector<8x8xf32>
    %134 = arith.addf %133, %37 : vector<8x8xf32>
    %cst_57 = arith.constant dense<0xFF800000> : vector<8xf32>
    %135 = vector.multi_reduction <maximumf>, %134, %cst_57 [1] : vector<8x8xf32> to vector<8xf32>
    %136 = vector.shape_cast %135 : vector<8xf32> to vector<8x1xf32>
    %137 = vector.broadcast %136 : vector<8x1xf32> to vector<8x8xf32>
    %138 = arith.subf %134, %137 : vector<8x8xf32>
    %139 = math.exp %138 : vector<8x8xf32>
    %cst_58 = arith.constant dense<0.000000e+00> : vector<8xf32>
    %140 = vector.multi_reduction <add>, %139, %cst_58 [1] : vector<8x8xf32> to vector<8xf32>
    %141 = vector.shape_cast %140 : vector<8xf32> to vector<8x1xf32>
    %142 = tpu.reciprocal %141 {approx = true} : vector<8x1xf32> -> vector<8x1xf32>
    %143 = vector.broadcast %142 : vector<8x1xf32> to vector<8x8xf32>
    %144 = arith.mulf %139, %143 : vector<8x8xf32>
    %145 = arith.truncf %144 : vector<8x8xf32> to vector<8x8xbf16>
    %cst_59 = arith.constant dense<0.000000e+00> : vector<8x8xf32>
    %146 = tpu.matmul %145, %132, %cst_59 {dimension_numbers = #tpu.dot_dimension_numbers<[1], [0], [0], [1], [0, 0, 1, 1], [], []>} : vector<8x8xbf16>, vector<8x8xbf16>, vector<8x8xf32> -> vector<8x8xf32>
    %147 = arith.truncf %146 : vector<8x8xf32> to vector<8x8xbf16>
    %148 = vector.extract_strided_slice %16 {offsets = [0, 0], sizes = [8, 32], strides = [1, 1]} : vector<32x32xbf16> to vector<8x32xbf16>
    %cst_60 = arith.constant dense<0.000000e+00> : vector<8x32xf32>
    %149 = tpu.matmul %147, %148, %cst_60 {dimension_numbers = #tpu.dot_dimension_numbers<[1], [0], [0], [1], [0, 0, 1, 1], [], []>} : vector<8x8xbf16>, vector<8x32xbf16>, vector<8x32xf32> -> vector<8x32xf32>
    %150 = vector.extract_strided_slice %127 {offsets = [0, 8], sizes = [8, 8], strides = [1, 1]} : vector<8x32xbf16> to vector<8x8xbf16>
    %151 = vector.extract_strided_slice %128 {offsets = [0, 8], sizes = [8, 8], strides = [1, 1]} : vector<8x32xbf16> to vector<8x8xbf16>
    %152 = vector.extract_strided_slice %129 {offsets = [0, 8], sizes = [8, 8], strides = [1, 1]} : vector<8x32xbf16> to vector<8x8xbf16>
    %cst_61 = arith.constant dense<0.000000e+00> : vector<8x8xf32>
    %153 = tpu.matmul %150, %151, %cst_61 {dimension_numbers = #tpu.dot_dimension_numbers<[1], [1], [0], [0], [0, 0, 1, 0], [], []>} : vector<8x8xbf16>, vector<8x8xbf16>, vector<8x8xf32> -> vector<8x8xf32>
    %154 = arith.addf %153, %37 : vector<8x8xf32>
    %cst_62 = arith.constant dense<0xFF800000> : vector<8xf32>
    %155 = vector.multi_reduction <maximumf>, %154, %cst_62 [1] : vector<8x8xf32> to vector<8xf32>
    %156 = vector.shape_cast %155 : vector<8xf32> to vector<8x1xf32>
    %157 = vector.broadcast %156 : vector<8x1xf32> to vector<8x8xf32>
    %158 = arith.subf %154, %157 : vector<8x8xf32>
    %159 = math.exp %158 : vector<8x8xf32>
    %cst_63 = arith.constant dense<0.000000e+00> : vector<8xf32>
    %160 = vector.multi_reduction <add>, %159, %cst_63 [1] : vector<8x8xf32> to vector<8xf32>
    %161 = vector.shape_cast %160 : vector<8xf32> to vector<8x1xf32>
    %162 = tpu.reciprocal %161 {approx = true} : vector<8x1xf32> -> vector<8x1xf32>
    %163 = vector.broadcast %162 : vector<8x1xf32> to vector<8x8xf32>
    %164 = arith.mulf %159, %163 : vector<8x8xf32>
    %165 = arith.truncf %164 : vector<8x8xf32> to vector<8x8xbf16>
    %cst_64 = arith.constant dense<0.000000e+00> : vector<8x8xf32>
    %166 = tpu.matmul %165, %152, %cst_64 {dimension_numbers = #tpu.dot_dimension_numbers<[1], [0], [0], [1], [0, 0, 1, 1], [], []>} : vector<8x8xbf16>, vector<8x8xbf16>, vector<8x8xf32> -> vector<8x8xf32>
    %167 = arith.truncf %166 : vector<8x8xf32> to vector<8x8xbf16>
    %168 = vector.extract_strided_slice %16 {offsets = [8, 0], sizes = [8, 32], strides = [1, 1]} : vector<32x32xbf16> to vector<8x32xbf16>
    %cst_65 = arith.constant dense<0.000000e+00> : vector<8x32xf32>
    %169 = tpu.matmul %167, %168, %cst_65 {dimension_numbers = #tpu.dot_dimension_numbers<[1], [0], [0], [1], [0, 0, 1, 1], [], []>} : vector<8x8xbf16>, vector<8x32xbf16>, vector<8x32xf32> -> vector<8x32xf32>
    %170 = arith.addf %149, %169 : vector<8x32xf32>
    %171 = vector.extract_strided_slice %127 {offsets = [0, 16], sizes = [8, 8], strides = [1, 1]} : vector<8x32xbf16> to vector<8x8xbf16>
    %172 = vector.extract_strided_slice %128 {offsets = [0, 16], sizes = [8, 8], strides = [1, 1]} : vector<8x32xbf16> to vector<8x8xbf16>
    %173 = vector.extract_strided_slice %129 {offsets = [0, 16], sizes = [8, 8], strides = [1, 1]} : vector<8x32xbf16> to vector<8x8xbf16>
    %cst_66 = arith.constant dense<0.000000e+00> : vector<8x8xf32>
    %174 = tpu.matmul %171, %172, %cst_66 {dimension_numbers = #tpu.dot_dimension_numbers<[1], [1], [0], [0], [0, 0, 1, 0], [], []>} : vector<8x8xbf16>, vector<8x8xbf16>, vector<8x8xf32> -> vector<8x8xf32>
    %175 = arith.addf %174, %37 : vector<8x8xf32>
    %cst_67 = arith.constant dense<0xFF800000> : vector<8xf32>
    %176 = vector.multi_reduction <maximumf>, %175, %cst_67 [1] : vector<8x8xf32> to vector<8xf32>
    %177 = vector.shape_cast %176 : vector<8xf32> to vector<8x1xf32>
    %178 = vector.broadcast %177 : vector<8x1xf32> to vector<8x8xf32>
    %179 = arith.subf %175, %178 : vector<8x8xf32>
    %180 = math.exp %179 : vector<8x8xf32>
    %cst_68 = arith.constant dense<0.000000e+00> : vector<8xf32>
    %181 = vector.multi_reduction <add>, %180, %cst_68 [1] : vector<8x8xf32> to vector<8xf32>
    %182 = vector.shape_cast %181 : vector<8xf32> to vector<8x1xf32>
    %183 = tpu.reciprocal %182 {approx = true} : vector<8x1xf32> -> vector<8x1xf32>
    %184 = vector.broadcast %183 : vector<8x1xf32> to vector<8x8xf32>
    %185 = arith.mulf %180, %184 : vector<8x8xf32>
    %186 = arith.truncf %185 : vector<8x8xf32> to vector<8x8xbf16>
    %cst_69 = arith.constant dense<0.000000e+00> : vector<8x8xf32>
    %187 = tpu.matmul %186, %173, %cst_69 {dimension_numbers = #tpu.dot_dimension_numbers<[1], [0], [0], [1], [0, 0, 1, 1], [], []>} : vector<8x8xbf16>, vector<8x8xbf16>, vector<8x8xf32> -> vector<8x8xf32>
    %188 = arith.truncf %187 : vector<8x8xf32> to vector<8x8xbf16>
    %189 = vector.extract_strided_slice %16 {offsets = [16, 0], sizes = [8, 32], strides = [1, 1]} : vector<32x32xbf16> to vector<8x32xbf16>
    %cst_70 = arith.constant dense<0.000000e+00> : vector<8x32xf32>
    %190 = tpu.matmul %188, %189, %cst_70 {dimension_numbers = #tpu.dot_dimension_numbers<[1], [0], [0], [1], [0, 0, 1, 1], [], []>} : vector<8x8xbf16>, vector<8x32xbf16>, vector<8x32xf32> -> vector<8x32xf32>
    %191 = arith.addf %170, %190 : vector<8x32xf32>
    %192 = vector.extract_strided_slice %127 {offsets = [0, 24], sizes = [8, 8], strides = [1, 1]} : vector<8x32xbf16> to vector<8x8xbf16>
    %193 = vector.extract_strided_slice %128 {offsets = [0, 24], sizes = [8, 8], strides = [1, 1]} : vector<8x32xbf16> to vector<8x8xbf16>
    %194 = vector.extract_strided_slice %129 {offsets = [0, 24], sizes = [8, 8], strides = [1, 1]} : vector<8x32xbf16> to vector<8x8xbf16>
    %cst_71 = arith.constant dense<0.000000e+00> : vector<8x8xf32>
    %195 = tpu.matmul %192, %193, %cst_71 {dimension_numbers = #tpu.dot_dimension_numbers<[1], [1], [0], [0], [0, 0, 1, 0], [], []>} : vector<8x8xbf16>, vector<8x8xbf16>, vector<8x8xf32> -> vector<8x8xf32>
    %196 = arith.addf %195, %37 : vector<8x8xf32>
    %cst_72 = arith.constant dense<0xFF800000> : vector<8xf32>
    %197 = vector.multi_reduction <maximumf>, %196, %cst_72 [1] : vector<8x8xf32> to vector<8xf32>
    %198 = vector.shape_cast %197 : vector<8xf32> to vector<8x1xf32>
    %199 = vector.broadcast %198 : vector<8x1xf32> to vector<8x8xf32>
    %200 = arith.subf %196, %199 : vector<8x8xf32>
    %201 = math.exp %200 : vector<8x8xf32>
    %cst_73 = arith.constant dense<0.000000e+00> : vector<8xf32>
    %202 = vector.multi_reduction <add>, %201, %cst_73 [1] : vector<8x8xf32> to vector<8xf32>
    %203 = vector.shape_cast %202 : vector<8xf32> to vector<8x1xf32>
    %204 = tpu.reciprocal %203 {approx = true} : vector<8x1xf32> -> vector<8x1xf32>
    %205 = vector.broadcast %204 : vector<8x1xf32> to vector<8x8xf32>
    %206 = arith.mulf %201, %205 : vector<8x8xf32>
    %207 = arith.truncf %206 : vector<8x8xf32> to vector<8x8xbf16>
    %cst_74 = arith.constant dense<0.000000e+00> : vector<8x8xf32>
    %208 = tpu.matmul %207, %194, %cst_74 {dimension_numbers = #tpu.dot_dimension_numbers<[1], [0], [0], [1], [0, 0, 1, 1], [], []>} : vector<8x8xbf16>, vector<8x8xbf16>, vector<8x8xf32> -> vector<8x8xf32>
    %209 = arith.truncf %208 : vector<8x8xf32> to vector<8x8xbf16>
    %210 = vector.extract_strided_slice %16 {offsets = [24, 0], sizes = [8, 32], strides = [1, 1]} : vector<32x32xbf16> to vector<8x32xbf16>
    %cst_75 = arith.constant dense<0.000000e+00> : vector<8x32xf32>
    %211 = tpu.matmul %209, %210, %cst_75 {dimension_numbers = #tpu.dot_dimension_numbers<[1], [0], [0], [1], [0, 0, 1, 1], [], []>} : vector<8x8xbf16>, vector<8x32xbf16>, vector<8x32xf32> -> vector<8x32xf32>
    %212 = arith.addf %191, %211 : vector<8x32xf32>
    %c8 = arith.constant 8 : index
    %c0_76 = arith.constant 0 : index
    %213 = vector.load %arg15[%c8, %c0_76] : memref<16x32xf32, #tpu.memory_space<vmem>>, vector<8x32xf32>
    %214 = arith.addf %213, %212 : vector<8x32xf32>
    %c8_77 = arith.constant 8 : index
    %c0_78 = arith.constant 0 : index
    %215 = vector.load %arg15[%c8_77, %c0_78] : memref<16x32xf32, #tpu.memory_space<vmem>>, vector<8x32xf32>
    tpu.vector_store %arg15[%c8_77, %c0_78], %214 {strides = array<i32>} : memref<16x32xf32, #tpu.memory_space<vmem>>, vector<8x32xf32>,
    %c0_i32_79 = arith.constant 0 : i32
    %216 = arith.cmpi eq, %arg1, %c0_i32_79 : i32
    %217 = arith.extui %216 : i1 to i32
    %c0_i32_80 = arith.constant 0 : i32
    %218 = arith.cmpi ne, %217, %c0_i32_80 : i32
    scf.if %218 {
      %c0_81 = arith.constant 0 : index
      %c0_82 = arith.constant 0 : index
      %219 = vector.load %arg15[%c0_81, %c0_82] : memref<16x32xf32, #tpu.memory_space<vmem>>, vector<16x32xf32>
      %c0_83 = arith.constant 0 : index
      %c0_84 = arith.constant 0 : index
      %220 = vector.load %arg12[%c0_83, %c0_84] : memref<1x32xf32, #tpu.memory_space<vmem>>, vector<1x32xf32>
      %221 = vector.broadcast %220 : vector<1x32xf32> to vector<16x32xf32>
      %222 = arith.addf %219, %221 : vector<16x32xf32>
      %c0_85 = arith.constant 0 : index
      %c0_86 = arith.constant 0 : index
      %223 = vector.load %arg13[%c0_85, %c0_86] : memref<16x32xf32, #tpu.memory_space<vmem>>, vector<16x32xf32>
      tpu.vector_store %arg13[%c0_85, %c0_86], %222 {strides = array<i32>} : memref<16x32xf32, #tpu.memory_space<vmem>>, vector<16x32xf32>,
    } else {
    }
    return
  }
  func.func @transform_0(%arg0: i32, %arg1: i32) -> (i32, i32) {
    %c0_i32 = arith.constant 0 : i32
    %c0_i32_0 = arith.constant 0 : i32
    return %arg0, %c0_i32 : i32, i32
  }
  func.func @transform_1(%arg0: i32, %arg1: i32) -> (i32, i32) {
    %c0_i32 = arith.constant 0 : i32
    %c0_i32_0 = arith.constant 0 : i32
    return %arg0, %c0_i32 : i32, i32
  }
  func.func @transform_2(%arg0: i32, %arg1: i32) -> (i32, i32) {
    %c0_i32 = arith.constant 0 : i32
    %c0_i32_0 = arith.constant 0 : i32
    return %arg0, %c0_i32 : i32, i32
  }
  func.func @transform_3(%arg0: i32, %arg1: i32) -> (i32, i32, i32) {
    %c0_i32 = arith.constant 0 : i32
    %c0_i32_0 = arith.constant 0 : i32
    %c0_i32_1 = arith.constant 0 : i32
    %c0_i32_2 = arith.constant 0 : i32
    return %c0_i32, %c0_i32_0, %c0_i32_1 : i32, i32, i32
  }
  func.func @transform_4(%arg0: i32, %arg1: i32) -> (i32, i32, i32) {
    %c0_i32 = arith.constant 0 : i32
    %c0_i32_0 = arith.constant 0 : i32
    %c0_i32_1 = arith.constant 0 : i32
    %c0_i32_2 = arith.constant 0 : i32
    return %c0_i32, %c0_i32_0, %c0_i32_1 : i32, i32, i32
  }
  func.func @transform_5(%arg0: i32, %arg1: i32) -> (i32, i32, i32) {
    %c0_i32 = arith.constant 0 : i32
    %c0_i32_0 = arith.constant 0 : i32
    %c0_i32_1 = arith.constant 0 : i32
    %c0_i32_2 = arith.constant 0 : i32
    return %c0_i32, %c0_i32_0, %c0_i32_1 : i32, i32, i32
  }
  func.func @transform_6(%arg0: i32, %arg1: i32) -> (i32, i32, i32) {
    %c0_i32 = arith.constant 0 : i32
    %c0_i32_0 = arith.constant 0 : i32
    %c0_i32_1 = arith.constant 0 : i32
    %c0_i32_2 = arith.constant 0 : i32
    return %c0_i32, %c0_i32_0, %c0_i32_1 : i32, i32, i32
  }
  func.func @transform_7(%arg0: i32, %arg1: i32) -> (i32, i32, i32) {
    %c0_i32 = arith.constant 0 : i32
    %c0_i32_0 = arith.constant 0 : i32
    %c0_i32_1 = arith.constant 0 : i32
    %c0_i32_2 = arith.constant 0 : i32
    return %c0_i32, %c0_i32_0, %c0_i32_1 : i32, i32, i32
  }
  func.func @transform_8(%arg0: i32, %arg1: i32) -> (i32, i32, i32) {
    %c0_i32 = arith.constant 0 : i32
    %c0_i32_0 = arith.constant 0 : i32
    %c0_i32_1 = arith.constant 0 : i32
    %c0_i32_2 = arith.constant 0 : i32
    return %c0_i32, %c0_i32_0, %c0_i32_1 : i32, i32, i32
  }
  func.func @transform_9(%arg0: i32, %arg1: i32) -> (i32, i32, i32) {
    %c0_i32 = arith.constant 0 : i32
    %c0_i32_0 = arith.constant 0 : i32
    %c0_i32_1 = arith.constant 0 : i32
    %c0_i32_2 = arith.constant 0 : i32
    return %c0_i32, %c0_i32_0, %c0_i32_1 : i32, i32, i32
  }
  func.func @transform_10(%arg0: i32, %arg1: i32) -> (i32, i32) {
    %c0_i32 = arith.constant 0 : i32
    %c0_i32_0 = arith.constant 0 : i32
    %c0_i32_1 = arith.constant 0 : i32
    return %c0_i32, %c0_i32_0 : i32, i32
  }
  func.func @transform_11(%arg0: i32, %arg1: i32) -> (i32, i32) {
    %c0_i32 = arith.constant 0 : i32
    %c0_i32_0 = arith.constant 0 : i32
    return %arg0, %c0_i32 : i32, i32
  }
}

</mosaic_0001>

<bundles_post_ra>
// kernel: tpu_custom_call.1
= control target key start
LH: loop header
LB: loop body
LE: loop exit
PB: predicated region body
PF: predicated region fallthrough
CT: control target
= control target key end

     0   :  { %16 = vsyncpa [#allocation5], 0  ;;  %s1555_s0 = inlined_call_operand.hbm [shape: f32[16,32], index: 0, kind: input, shape index: {}]   ;;  %s1556_s1 = inlined_call_operand.hbm [shape: f32[16,32], index: 1, kind: input, shape index: {}]   ;;  %s1557_s2 = inlined_call_operand.hbm [shape: f32[16,32], index: 2, kind: input, shape index: {}]   ;;  %s1558_s3 = inlined_call_operand.hbm [shape: bf16[1,32,32], index: 3, kind: input, shape index: {}]   ;;  %s1559_s4 = inlined_call_operand.vmem [shape: f32[1,1,32], index: 4, kind: input, shape index: {}]   ;;  %s1560_s5 = inlined_call_operand.hbm [shape: bf16[1,32,32], index: 5, kind: input, shape index: {}]   ;;  %s1561_s6 = inlined_call_operand.vmem [shape: f32[1,1,32], index: 6, kind: input, shape index: {}]   ;;  %s1562_s7 = inlined_call_operand.hbm [shape: bf16[1,32,32], index: 7, kind: input, shape index: {}]   ;;  %s1563_s8 = inlined_call_operand.vmem [shape: f32[1,1,32], index: 8, kind: input, shape index: {}]   ;;  %s1564_s9 = inlined_call_operand.hbm [shape: bf16[1,32,32], index: 9, kind: input, shape index: {}]   ;;  %s1565_s10 = inlined_call_operand.vmem [shape: f32[1,32], index: 10, kind: input, shape index: {}]   ;;  %s1566_s11 = inlined_call_operand.hbm [shape: f32[16,32], index: 11, kind: output, shape index: {}]  }
   0x1   :  { %17 = vsyncpa [#allocation8], 0 }
   0x2   :  { %18 = vsyncpa [#allocation11], 0 }
   0x3   :  { %19 = vsyncpa [#allocation14], 0 }
   0x4   :  { %20 = vsyncpa [#allocation6], 0  ;;  %s38_s19 = sshll.u32 %s1556_s1, 4  ;;  %s1262_s20 = smov [#allocation7]   ;;  %s39_s19 = int_to_ptr.hbm [resolvable:$true] %s38_s19 }
   0x5   :  { %s40_s21 = sshll.u32 %s1262_s20, 4  ;;  %s64_s24 = sshll.u32 %s1558_s3, 4  ;;  %s41_s21 = int_to_ptr.vmem [resolvable:$true] %s40_s21  ;;  %s65_s24 = int_to_ptr.hbm [resolvable:$true] %s64_s24 }
   0x6   :  { %s1263_s25 = smov 128   ;;  %s1264_s26 = smov 8  }
   0x7   :  { %46 = dma.hbm_to_vmem [thread:$0]  %s39_s19, 256, %s41_s21, [#allocation8], %s1263_s25, %s1263_s25, %s1264_s26  }
   0x8   :  { %s1265_s27 = smov [#allocation10]   ;;  %s1266_s29 = smov 64  }
   0x9   :  { %s66_s28 = sshll.u32 %s1265_s27, 4  ;;  %s1267_s1 = smov 4   ;;  %s67_s28 = int_to_ptr.vmem [resolvable:$true] %s66_s28 }
   0xa   :  { %72 = dma.hbm_to_vmem [thread:$0]  %s65_s24, 256, %s67_s28, [#allocation11], %s1266_s29, %s1266_s29, %s1267_s1  }
   0xb   :  { %s94_s3 = sshll.u32 %s1562_s7, 4  ;;  %s1268_s13 = smov [#allocation13]   ;;  %s95_s3 = int_to_ptr.hbm [resolvable:$true] %s94_s3 }
   0xc   :  { %s96_s14 = sshll.u32 %s1268_s13, 4  ;;  %s25_s17 = sshll.u32 %s1555_s0, 4  ;;  %s97_s14 = int_to_ptr.vmem [resolvable:$true] %s96_s14  ;;  %s26_s17 = int_to_ptr.hbm [resolvable:$true] %s25_s17 }
   0xd   :  { %102 = dma.hbm_to_vmem [thread:$0]  %s95_s3, 256, %s97_s14, [#allocation14], %s1266_s29, %s1266_s29, %s1267_s1  }
   0xe   :  { %s1269_s18 = smov [#allocation4]   ;;  %s51_s22 = sshll.u32 %s1557_s2, 4  ;;  %s52_s22 = int_to_ptr.hbm [resolvable:$true] %s51_s22 }
   0xf   :  { %s27_s19 = sshll.u32 %s1269_s18, 4  ;;  %s79_s0 = sshll.u32 %s1560_s5, 4  ;;  %s28_s19 = int_to_ptr.vmem [resolvable:$true] %s27_s19  ;;  %s80_s0 = int_to_ptr.hbm [resolvable:$true] %s79_s0 }
  0x10   :  { %33 = dma.hbm_to_vmem [thread:$0]  %s26_s17, 256, %s28_s19, [#allocation5], %s1263_s25, %s1263_s25, %s1264_s26  }
  0x11   :  { %s1270_s24 = smov [#allocation9]   ;;  %s1271_s28 = smov [#allocation12]  }
  0x12   :  { %s53_s27 = sshll.u32 %s1270_s24, 4  ;;  %s81_s2 = sshll.u32 %s1271_s28, 4  ;;  %s54_s27 = int_to_ptr.vmem [resolvable:$true] %s53_s27  ;;  %s82_s2 = int_to_ptr.vmem [resolvable:$true] %s81_s2 }
  0x13   :  { %59 = dma.hbm_to_vmem [thread:$0]  %s52_s22, 256, %s54_s27, [#allocation8], %s1263_s25, %s1263_s25, %s1264_s26  }
  0x14   :  { %s109_s3 = sshll.u32 %s1564_s9, 4  ;;  %s1272_s5 = smov [#allocation15]   ;;  %s110_s3 = int_to_ptr.hbm [resolvable:$true] %s109_s3 }
  0x15   :  { %87 = dma.hbm_to_vmem [thread:$0]  %s80_s0, 256, %s82_s2, [#allocation11], %s1266_s29, %s1266_s29, %s1267_s1  }
  0x16   :  { %s111_s13 = sshll.u32 %s1272_s5, 4  ;;  %s112_s13 = int_to_ptr.vmem [resolvable:$true] %s111_s13 }
  0x17   :  { %117 = dma.hbm_to_vmem [thread:$0]  %s110_s3, 256, %s112_s13, [#allocation14], %s1266_s29, %s1266_s29, %s1267_s1  }
  0x18   :  { %1252 = dma.done.wait [#allocation5], 256  }
  0x19   :  { %1253 = vsyncadd [#allocation5], 4294967040 }
  0x1a   :  { %1254 = dma.done.wait [#allocation8], 512  }
  0x1b   :  { %1255 = vsyncadd [#allocation8], 4294966784 }
  0x1c   :  { %1256 = dma.done.wait [#allocation11], 512  }
  0x1d   :  { %1257 = vsyncadd [#allocation11], 4294966784 }
  0x1e   :  { %1258 = dma.done.wait [#allocation14], 512  }
  0x1f   :  { %1259 = vsyncadd [#allocation14], 4294966784  ;;  %v1003_v0 = vld [vmem:[#allocation10 + $0x8] sm:$0xff]  ;;  %v1005_v1 = vld [vmem:[#allocation12 + $0x8] sm:$0xff]  ;;  %vm165_vm0 = vcmask 261120   ;;  %vm163_vm1 = vcmask 64512   ;;  %v153_v24 = vlaneseq }
  0x20   :  { %v1002_v2 = vld [vmem:[#allocation10] sm:$0xff]  ;;  %v1004_v3 = vld [vmem:[#allocation12] sm:$0xff]  ;;  %v169_v5 = vld [vmem:[#allocation4 + $0x8] sm:$0xff]  ;;  %219 = vmatpush.bf16.msra.mxu0 %v1003_v0  ;;  %254 = vmatpush.bf16.msra.mxu1 %v1005_v1  ;;  %vm337_vm3 = vcmask 1043456   ;;  %s935_s22 = sshll.u32 %s1566_s11, 4  ;;  %s936_s22 = int_to_ptr.hbm [resolvable:$true] %s935_s22 }
  0x21   :  { %v168_v4 = vld [vmem:[#allocation4] sm:$0xff]  ;;  %v171_v6 = vld [vmem:[#allocation7] sm:$0xff]  ;;  %v172_v7 = vld [vmem:[#allocation7 + $0x8] sm:$0xff]  ;;  %v154_v25 = vshrl.u32 %v153_v24, 7  ;;  %v156_v26 = vand.u32 127, %v153_v24 }
  0x22   :  { %v170_v8 = vpack.c.bf16 %v169_v5, %v168_v4  ;;  %v173_v9 = vpack.c.bf16 %v172_v7, %v171_v6  ;;  %v1385_v10 = vld [vmem:[%s1559_s4] ss:$0 sm:$0xff]  ;;  %s1273_s4 = smov 112   ;;  %v1007_v32 = vld [vmem:[#allocation13 + $0x8] sm:$0xff]  ;;  %v1006_v33 = vld [vmem:[#allocation13] sm:$0xff] }
  0x23   :  { %v1390_v11 = vld [vmem:[%s1561_s6] ss:$0 sm:$0xff]  ;;  %s1274_s6 = smov 120   ;;  %v157_v27 = vsub.s32 %v154_v25, %v156_v26  ;;  %287 = vmatpush.bf16.msra.mxu2 %v1007_v32  ;;  %v174_v34 = vld [vmem:[#allocation9] sm:$0xff] }
  0x24   :  { %220 = vmatpush.bf16.msra.mxu0 %v1002_v2  ;;  %255 = vmatpush.bf16.msra.mxu1 %v1004_v3  ;;  %v175_v35 = vld [vmem:[#allocation9 + $0x8] sm:$0xff] }
  0x25   :  { %v159_v28 = vsub.s32 0, %v157_v27  ;;  %vm158_vm2 = vcmp.lt.s32.totalorder %v157_v27, 0  ;;  %v176_v40 = vpack.c.bf16 %v175_v35, %v174_v34  ;;  %v1425_v55 = vld [vmem:[%s1563_s8] ss:$0 sm:$0xff]  ;;  %s1275_s8 = smov 104  }
  0x27   :  { %959 = vmatmul.msk.bf16.vlgmr.msra.gmra.mxu0 %vm165_vm0, %v170_v8  ;;  %968 = vmatmul.msk.bf16.vlgmr.msra.gmra.mxu1 %vm165_vm0, %v173_v9  ;;  %v160_v29 = vsel %vm158_vm2, %v159_v28, %v157_v27 }
  0x28   :  { %v161_v30 = vcvt.s32.f32 %v160_v29  ;;  %288 = vmatpush.bf16.msra.mxu2 %v1006_v33  ;;  %v190_v29 = vld [vmem:[#allocation15 + $0x4] sm:$0xf] }
  0x2a   :  { %v162_v31 = vmul.f32 -0.1, %v161_v30  ;;  %v425_v30 = vsel %vm337_vm3, %v190_v29, 0 }
  0x2b   :  { %977 = vmatmul.msk.bf16.vlgmr.msra.gmra.mxu2 %vm165_vm0, %v176_v40 }
  0x2c   :  { %164 = vst.msk [vmem:[#allocation2] sm:$0xff] %vm163_vm1, %v162_v31 }
  0x33   :  { %v1416_v46 = vld [vmem:[#allocation2] sm:$0xff] }
  0xa4   :  { %v222_v12 = vpop.f32.mrf.mxu0  ;;  %v257_v13 = vpop.f32.mrf.mxu1 }
  0xa5   :  { %v223_v14 = vadd.f32 %v1385_v10, %v222_v12  ;;  %v258_v15 = vadd.f32 %v1390_v11, %v257_v13 }
  0xa7   :  { %v227_v16 = vmul.f32 0.35355338, %v223_v14  ;;  %v297_v17 = vpack.c.bf16 %v258_v15, %v258_v15 }
  0xa9   :  { %v295_v18 = vpack.c.bf16 %v227_v16, %v227_v16  ;;  %v361_v19 = vunpack.c.l.b16 %v297_v17  ;;  %v307_v20 = vsel %vm163_vm1, %v297_v17, 0 }
  0xaa   :  { %316 = vmatpush.bf16.xpose.msra.mxu3 %v307_v20 }
  0xab   :  { %v1395_v21 = vpack.c.b16 %v361_v19, %v361_v19  ;;  %v356_v22 = vunpack.c.l.b16 %v295_v18 }
  0xac   :  { %v1414_v45 = vpop.f32.mrf.mxu1  ;;  %v224_v31 = vpop.f32.mrf.mxu0 }
  0xad   :  { %461 = vrot.lane.b32.xlu1 %v1395_v21, %s1273_s4  ;;  %363 = vrot.lane.b32.xlu0 %v1395_v21, %s1274_s6  ;;  %v1402_v23 = vpack.c.b16 %v356_v22, %v356_v22  ;;  %v225_v32 = vadd.f32 %v1385_v10, %v224_v31  ;;  %v191_v10 = vld [vmem:[#allocation15 + $0x8] sm:$0xf] }
  0xae   :  { %v290_v56 = vpop.f32.mrf.mxu2 }
  0xaf   :  { %v291_v57 = vadd.f32 %v1425_v55, %v290_v56  ;;  %v228_v33 = vmul.f32 0.35355338, %v225_v32 }
  0xb1   :  { %978 = vmatmul.msk.bf16.vlgmr.msra.gmra.mxu3 %vm163_vm1, %v295_v18  ;;  %v299_v58 = vpack.c.bf16 %v291_v57, %v291_v57  ;;  %v296_v34 = vpack.c.bf16 %v228_v33, %v228_v33 }
  0xb2   :  { %434 = vmatpush.bf16.msrb.mxu3 %v425_v30 }
  0xb3   :  { %v397_v59 = vunpack.c.l.b16 %v299_v58  ;;  %v339_v61 = vsel %vm337_vm3, %v299_v58, 0  ;;  %v668_v35 = vunpack.c.l.b16 %v296_v34 }
  0xb4   :  { %348 = vmatpush.bf16.msrb.mxu0 %v339_v61 }
  0xb5   :  { %459 = vrot.lane.b32.xlu1 %v1402_v23, %s1273_s4  ;;  %358 = vrot.lane.b32.xlu0 %v1402_v23, %s1274_s6  ;;  %v398_v60 = vpack.c.b16 %v397_v59, %v397_v59 }
  0xbd   :  { %399 = vrot.lane.b32.xlu1 %v398_v60, %s1274_s6 }
  0xc5   :  { %494 = vrot.lane.b32.xlu1 %v398_v60, %s1273_s4 }
 0x11f   :  { %v462_v36 = vpop.permute.xlu1 %461  ;;  %v364_v37 = vpop.permute.xlu0 %363 }
 0x120   :  { %v467_v38 = vsel %vm163_vm1, %v462_v36, 0  ;;  %v369_v39 = vsel %vm163_vm1, %v364_v37, 0  ;;  %v260_v36 = vadd.f32 %v1390_v11, %v1414_v45  ;;  %v292_v11 = vpop.f32.mrf.mxu2 }
 0x121   :  { %378 = vmatpush.bf16.xpose.msrb.mxu1 %v369_v39 }
 0x122   :  { %v298_v37 = vpack.c.bf16 %v260_v36, %v260_v36 }
 0x124   :  { %v673_v39 = vunpack.c.l.b16 %v298_v37 }
 0x126   :  { %v1453_v40 = vpack.c.b16 %v673_v39, %v673_v39 }
 0x127   :  { %v359_v41 = vpop.permute.xlu0 %358  ;;  %v460_v43 = vpop.permute.xlu1 %459 }
 0x128   :  { %980 = vmatmul.msk.bf16.vlgmr.msrb.gmra.mxu1 %vm163_vm1, %v359_v41  ;;  %v520_v41 = vsel %vm337_vm3, %v191_v10, 0 }
 0x129   :  { %476 = vmatpush.bf16.xpose.msra.mxu1 %v467_v38  ;;  %v1449_v38 = vpack.c.b16 %v668_v35, %v668_v35  ;;  %529 = vmatpush.bf16.msra.mxu3 %v520_v41 }
 0x12f   :  { %v400_v12 = vpop.permute.xlu1 %399 }
 0x130   :  { %v405_v13 = vsel %vm337_vm3, %v400_v12, 0 }
 0x131   :  { %414 = vmatpush.bf16.msrb.mxu2 %v405_v13 }
 0x134   :  { %v318_v42 = vpop.f32.mrf.mxu3 }
 0x135   :  { %v319_v8 = vadd.f32 %v318_v42, %v1416_v46  ;;  %v189_v42 = vld [vmem:[#allocation15] sm:$0xf] }
 0x137   :  { %v322_v9 = vsel %vm163_vm1, %v319_v8, -inf  ;;  %v495_v14 = vpop.permute.xlu1 %494 }
 0x138   :  { %984 = vmatmul.msk.bf16.vlgmr.msra.gmra.mxu1 %vm163_vm1, %v460_v43  ;;  %v500_v15 = vsel %vm337_vm3, %v495_v14, 0  ;;  %v444_v43 = vsel %vm337_vm3, %v189_v42, 0 }
 0x139   :  { %509 = vmatpush.bf16.msra.mxu2 %v500_v15  ;;  %453 = vmatpush.bf16.msra.mxu0 %v444_v43 }
 0x13c   :  { %v320_v44 = vpop.f32.mrf.mxu3 }
 0x1a5   :  { %v380_v47 = vpop.f32.mrf.mxu1 }
 0x1a6   :  { %v381_v48 = vadd.f32 %v380_v47, %v1416_v46  ;;  %v620_v47 = vsel %vm163_vm1, %v298_v37, 0 }
 0x1a8   :  { %v384_v49 = vsel %vm163_vm1, %v381_v48, -inf }
 0x1a9   :  { %385 = vmax.xlane.f32.xlu2 %v384_v49 }
 0x1ad   :  { %v382_v50 = vpop.f32.mrf.mxu1 }
 0x1b5   :  { %v478_v51 = vpop.f32.mrf.mxu1 }
 0x1b6   :  { %v479_v52 = vadd.f32 %v478_v51, %v1416_v46 }
 0x1b8   :  { %v482_v53 = vsel %vm163_vm1, %v479_v52, -inf }
 0x1b9   :  { %483 = vmax.xlane.f32.xlu2 %v482_v53 }
 0x1bd   :  { %v480_v54 = vpop.f32.mrf.mxu1 }
 0x21c   :  { %v386_v62 = vpop.xlane.xlu2 %385 }
 0x21d   :  { %v387_v63 = vsub.f32 %v381_v48, %v386_v62  ;;  %v293_v62 = vadd.f32 %v1425_v55, %v292_v11 }
 0x21f   :  { %v388_v0 = vmul.f32 1.442695, %v387_v63 }
 0x221   :  { %1028 = vpow2.f32 %v388_v0  ;;  %v1469_v0 = vpack.c.bf16 %v293_v62, %v293_v62 }
 0x227   :  { %v1029_v1 = vpop.eup %1028 }
 0x228   :  { %v390_v2 = vsel %vm163_vm1, %v1029_v1, 0.0 }
 0x229   :  { %391 = vadd.xlane.f32.xlu0 %v390_v2 }
 0x22c   :  { %v484_v3 = vpop.xlane.xlu2 %483 }
 0x22d   :  { %v485_v4 = vsub.f32 %v479_v52, %v484_v3  ;;  %v651_v3 = vsel %vm337_vm3, %v1469_v0, 0 }
 0x22f   :  { %v486_v5 = vmul.f32 1.442695, %v485_v4 }
 0x231   :  { %1030 = vpow2.f32 %v486_v5 }
 0x237   :  { %v1031_v6 = vpop.eup %1030 }
 0x238   :  { %v488_v7 = vsel %vm163_vm1, %v1031_v6, 0.0 }
 0x239   :  { %489 = vadd.xlane.f32.xlu2 %v488_v7 }
 0x241   :  { %323 = vmax.xlane.f32.xlu2 %v322_v9 }
 0x259   :  { %538 = vrot.lane.b32.xlu2 %v1395_v21, %s1275_s8 }
 0x261   :  { %536 = vrot.lane.b32.xlu2 %v1402_v23, %s1275_s8 }
 0x29c   :  { %v392_v16 = vpop.xlane.xlu0 %391 }
 0x29d   :  { %1032 = vrcp.f32 %v392_v16 }
 0x2a3   :  { %v1033_v17 = vpop.eup %1032 }
 0x2a4   :  { %v394_v18 = vmul.f32 %v1033_v17, %v1029_v1 }
 0x2a6   :  { %v395_v19 = vpack.c.bf16 %v394_v18, %v394_v18 }
 0x2a8   :  { %981 = vmatmul.msk.bf16.vlgmr.msrb.gmra.mxu2 %vm163_vm1, %v395_v19 }
 0x2ac   :  { %v490_v20 = vpop.xlane.xlu2 %489 }
 0x2ad   :  { %1034 = vrcp.f32 %v490_v20 }
 0x2b3   :  { %v1035_v21 = vpop.eup %1034 }
 0x2b4   :  { %v492_v22 = vmul.f32 %v1035_v21, %v1031_v6  ;;  %v324_v23 = vpop.xlane.xlu2 %323 }
 0x2b5   :  { %v325_v24 = vsub.f32 %v319_v8, %v324_v23 }
 0x2b6   :  { %v493_v25 = vpack.c.bf16 %v492_v22, %v492_v22 }
 0x2b7   :  { %v326_v26 = vmul.f32 1.442695, %v325_v24 }
 0x2b8   :  { %985 = vmatmul.msk.bf16.vlgmr.msra.gmra.mxu2 %vm163_vm1, %v493_v25 }
 0x2b9   :  { %1036 = vpow2.f32 %v326_v26 }
 0x2bc   :  { %v539_v54 = vpop.permute.xlu2 %538 }
 0x2bd   :  { %v544_v57 = vsel %vm163_vm1, %v539_v54, 0 }
 0x2bf   :  { %v1037_v27 = vpop.eup %1036 }
 0x2c0   :  { %v328_v28 = vsel %vm163_vm1, %v1037_v27, 0.0 }
 0x2c1   :  { %329 = vadd.xlane.f32.xlu1 %v328_v28 }
 0x2c4   :  { %v537_v7 = vpop.permute.xlu2 %536 }
 0x2da   :  { %571 = vrot.lane.b32.xlu1 %v398_v60, %s1275_s8 }
 0x2e2   :  { %670 = vrot.lane.b32.xlu1 %v1449_v38, %s1274_s6 }
 0x2ea   :  { %841 = vrot.lane.b32.xlu1 %v1453_v40, %s1275_s8 }
 0x32b   :  { %v416_v44 = vpop.f32.mrf.mxu2 }
 0x32c   :  { %v420_v45 = vpack.c.bf16 %v416_v44, %v416_v44 }
 0x32e   :  { %982 = vmatmul.msk.bf16.vlgmr.msrb.gmra.mxu3 %vm163_vm1, %v420_v45 }
 0x32f   :  { %629 = vmatpush.bf16.xpose.msrb.mxu3 %v620_v47 }
 0x333   :  { %v418_v48 = vpop.f32.mrf.mxu2 }
 0x334   :  { %v330_v49 = vpop.xlane.xlu1 %329  ;;  %v192_v48 = vld [vmem:[#allocation15 + $0xc] sm:$0xf] }
 0x335   :  { %1038 = vrcp.f32 %v330_v49  ;;  %v1503_v49 = vsel %vm337_vm3, %v192_v48, 0 }
 0x336   :  { %606 = vmatpush.bf16.msrb.mxu2 %v1503_v49 }
 0x33b   :  { %v1039_v50 = vpop.eup %1038  ;;  %v511_v51 = vpop.f32.mrf.mxu2 }
 0x33c   :  { %v332_v52 = vmul.f32 %v1039_v50, %v1037_v27  ;;  %v515_v53 = vpack.c.bf16 %v511_v51, %v511_v51 }
 0x33e   :  { %986 = vmatmul.msk.bf16.vlgmr.msra.gmra.mxu3 %vm163_vm1, %v515_v53  ;;  %v333_v56 = vpack.c.bf16 %v332_v52, %v332_v52 }
 0x33f   :  { %743 = vmatpush.bf16.msra.mxu3 %v425_v30 }
 0x340   :  { %979 = vmatmul.msk.bf16.vlgmr.msrb.gmra.mxu0 %vm163_vm1, %v333_v56 }
 0x341   :  { %553 = vmatpush.bf16.xpose.msrb.mxu0 %v544_v57 }
 0x343   :  { %v513_v58 = vpop.f32.mrf.mxu2 }
 0x34c   :  { %v572_v59 = vpop.permute.xlu1 %571 }
 0x34d   :  { %v577_v60 = vsel %vm337_vm3, %v572_v59, 0 }
 0x34e   :  { %586 = vmatpush.bf16.msrb.mxu1 %v577_v60  ;;  %990 = vmatmul.msk.bf16.vlgmr.msrb.gmra.mxu3 %vm163_vm1, %v296_v34 }
 0x34f   :  { %832 = vmatpush.bf16.msrb.mxu3 %v520_v41 }
 0x354   :  { %v671_v27 = vpop.permute.xlu1 %670 }
 0x35c   :  { %v842_v33 = vpop.permute.xlu1 %841 }
 0x35d   :  { %v847_v35 = vsel %vm163_vm1, %v842_v33, 0 }
 0x3b1   :  { %v1466_v61 = vpop.f32.mrf.mxu3 }
 0x3b9   :  { %v438_v63 = vpop.f32.mrf.mxu3 }
 0x3bd   :  { %v350_v1 = vpop.f32.mrf.mxu0 }
 0x3be   :  { %v354_v2 = vpack.c.bf16 %v350_v1, %v350_v1 }
 0x3c0   :  { %983 = vmatmul.msk.bf16.vlgmr.msra.gmra.mxu0 %vm163_vm1, %v354_v2 }
 0x3c1   :  { %660 = vmatpush.bf16.msra.mxu0 %v651_v3  ;;  %v1474_v4 = vpop.f32.mrf.mxu3 }
 0x3c5   :  { %v352_v5 = vpop.f32.mrf.mxu0 }
 0x3c6   :  { %v1276_v5 = vmov 0.0  }
 0x3c7   :  { %166 = vst.msk [vmem:[#allocation3] sm:$0xff] %vm165_vm0, %v1276_v5 }
 0x3c8   :  { %167 = vst.msk [vmem:[#allocation3 + $0x8] sm:$0xff] %vm165_vm0, %v1276_v5 }
 0x3c9   :  { %v533_v6 = vpop.f32.mrf.mxu3 }
 0x3cf   :  { %v913_v5 = vld [vmem:[#allocation3 + $0x8] sm:$0xff] }
 0x3d0   :  { %987 = vmatmul.msk.bf16.vlgmr.msrb.gmra.mxu0 %vm163_vm1, %v537_v7 }
 0x3d1   :  { %v631_v8 = vpop.f32.mrf.mxu3  ;;  %759 = vmatpush.bf16.msrb.mxu0 %v444_v43 }
 0x3d2   :  { %v632_v55 = vadd.f32 %v631_v8, %v1416_v46  ;;  %v709_v8 = vunpack.c.l.b16 %v1469_v0 }
 0x3d4   :  { %v635_v9 = vsel %vm163_vm1, %v632_v55, -inf }
 0x3d5   :  { %636 = vmax.xlane.f32.xlu0 %v635_v9 }
 0x3d9   :  { %v633_v12 = vpop.f32.mrf.mxu3 }
 0x43d   :  { %v1479_v13 = vpop.f32.mrf.mxu0 }
 0x445   :  { %v457_v14 = vpop.f32.mrf.mxu0 }
 0x446   :  { %v613_v14 = vld [vmem:[#allocation3] sm:$0xff] }
 0x448   :  { %v637_v15 = vpop.xlane.xlu0 %636 }
 0x449   :  { %v638_v16 = vsub.f32 %v632_v55, %v637_v15  ;;  %v710_v55 = vpack.c.b16 %v709_v8, %v709_v8 }
 0x44b   :  { %v639_v17 = vmul.f32 1.442695, %v638_v16 }
 0x44d   :  { %1040 = vpow2.f32 %v639_v17  ;;  %v555_v18 = vpop.f32.mrf.mxu0 }
 0x44e   :  { %v556_v19 = vadd.f32 %v555_v18, %v1416_v46 }
 0x450   :  { %v559_v20 = vsel %vm163_vm1, %v556_v19, -inf }
 0x451   :  { %560 = vmax.xlane.f32.xlu0 %v559_v20  ;;  %v1528_v20 = vld [vmem:[%s1565_s10] ss:$0 sm:$0xff]  ;;  %s1277_s10 = smov [#allocation16]  }
 0x452   :  { %s933_s19 = sshll.u32 %s1277_s10, 4  ;;  %s934_s19 = int_to_ptr.vmem [resolvable:$true] %s933_s19 }
 0x453   :  { %v1041_v21 = vpop.eup %1040 }
 0x454   :  { %v641_v22 = vsel %vm163_vm1, %v1041_v21, 0.0 }
 0x455   :  { %642 = vadd.xlane.f32.xlu2 %v641_v22  ;;  %v557_v23 = vpop.f32.mrf.mxu0 }
 0x46d   :  { %765 = vrot.lane.b32.xlu2 %v1449_v38, %s1273_s4 }
 0x4c4   :  { %v561_v24 = vpop.xlane.xlu0 %560 }
 0x4c5   :  { %v562_v25 = vsub.f32 %v556_v19, %v561_v24 }
 0x4c7   :  { %v563_v26 = vmul.f32 1.442695, %v562_v25 }
 0x4c8   :  { %v643_v28 = vpop.xlane.xlu2 %642 }
 0x4c9   :  { %1042 = vpow2.f32 %v563_v26 }
 0x4ca   :  { %1044 = vrcp.f32 %v643_v28 }
 0x4cf   :  { %v1043_v29 = vpop.eup %1042 }
 0x4d0   :  { %v1045_v30 = vpop.eup %1044  ;;  %v565_v31 = vsel %vm163_vm1, %v1043_v29, 0.0  ;;  %v766_v47 = vpop.permute.xlu2 %765 }
 0x4d1   :  { %v645_v32 = vmul.f32 %v1045_v30, %v1041_v21  ;;  %566 = vadd.xlane.f32.xlu0 %v565_v31 }
 0x4d3   :  { %v646_v34 = vpack.c.bf16 %v645_v32, %v645_v32 }
 0x4d5   :  { %991 = vmatmul.msk.bf16.vlgmr.msra.gmra.mxu0 %vm163_vm1, %v646_v34 }
 0x4d6   :  { %856 = vmatpush.bf16.xpose.msra.mxu0 %v847_v35 }
 0x4e5   :  { %675 = vrot.lane.b32.xlu0 %v1453_v40, %s1274_s6 }
 0x4ed   :  { %767 = vrot.lane.b32.xlu0 %v1453_v40, %s1273_s4 }
 0x4f5   :  { %839 = vrot.lane.b32.xlu0 %v1449_v38, %s1275_s8 }
 0x544   :  { %v567_v36 = vpop.xlane.xlu0 %566 }
 0x545   :  { %1046 = vrcp.f32 %v567_v36 }
 0x54b   :  { %v1047_v37 = vpop.eup %1046 }
 0x54c   :  { %v569_v39 = vmul.f32 %v1047_v37, %v1043_v29 }
 0x54e   :  { %v570_v10 = vpack.c.bf16 %v569_v39, %v569_v39 }
 0x550   :  { %988 = vmatmul.msk.bf16.vlgmr.msrb.gmra.mxu1 %vm163_vm1, %v570_v10 }
 0x552   :  { %v662_v41 = vpop.f32.mrf.mxu0 }
 0x553   :  { %v666_v42 = vpack.c.bf16 %v662_v41, %v662_v41 }
 0x555   :  { %995 = vmatmul.msk.bf16.vlgmr.msrb.gmra.mxu0 %vm163_vm1, %v666_v42 }
 0x557   :  { %v676_v43 = vpop.permute.xlu0 %675 }
 0x558   :  { %v681_v11 = vsel %vm163_vm1, %v676_v43, 0 }
 0x559   :  { %690 = vmatpush.bf16.xpose.msra.mxu1 %v681_v11 }
 0x55a   :  { %v664_v44 = vpop.f32.mrf.mxu0 }
 0x55f   :  { %v768_v40 = vpop.permute.xlu0 %767 }
 0x560   :  { %v773_v45 = vsel %vm163_vm1, %v768_v40, 0  ;;  %992 = vmatmul.msk.bf16.vlgmr.msra.gmra.mxu1 %vm163_vm1, %v671_v27 }
 0x561   :  { %782 = vmatpush.bf16.xpose.msrb.mxu1 %v773_v45 }
 0x567   :  { %v840_v38 = vpop.permute.xlu0 %839 }
 0x568   :  { %999 = vmatmul.msk.bf16.vlgmr.msra.gmra.mxu0 %vm163_vm1, %v840_v38 }
 0x570   :  { %996 = vmatmul.msk.bf16.vlgmr.msrb.gmra.mxu1 %vm163_vm1, %v766_v47 }
 0x5cd   :  { %v588_v50 = vpop.f32.mrf.mxu1 }
 0x5ce   :  { %v592_v51 = vpack.c.bf16 %v588_v50, %v588_v50 }
 0x5d0   :  { %989 = vmatmul.msk.bf16.vlgmr.msrb.gmra.mxu2 %vm163_vm1, %v592_v51 }
 0x5d2   :  { %v1507_v52 = vpop.f32.mrf.mxu0 }
 0x5d5   :  { %v590_v53 = vpop.f32.mrf.mxu1 }
 0x5da   :  { %v763_v54 = vpop.f32.mrf.mxu0 }
 0x5dd   :  { %v692_v56 = vpop.f32.mrf.mxu1 }
 0x5de   :  { %v693_v57 = vadd.f32 %v692_v56, %v1416_v46 }
 0x5e0   :  { %v696_v58 = vsel %vm163_vm1, %v693_v57, -inf }
 0x5e1   :  { %697 = vmax.xlane.f32.xlu1 %v696_v58 }
 0x5e5   :  { %v694_v59 = vpop.f32.mrf.mxu1  ;;  %v858_v60 = vpop.f32.mrf.mxu0 }
 0x5e6   :  { %v859_v62 = vadd.f32 %v858_v60, %v1416_v46 }
 0x5e8   :  { %v862_v63 = vsel %vm163_vm1, %v859_v62, -inf }
 0x5e9   :  { %863 = vmax.xlane.f32.xlu2 %v862_v63 }
 0x5ed   :  { %v784_v1 = vpop.f32.mrf.mxu1  ;;  %v860_v2 = vpop.f32.mrf.mxu0 }
 0x5ee   :  { %v785_v3 = vadd.f32 %v784_v1, %v1416_v46  ;;  %v456_v46 = vadd.f32 %v1479_v13, %v1466_v61 }
 0x5f0   :  { %v788_v6 = vsel %vm163_vm1, %v785_v3, -inf  ;;  %v535_v9 = vadd.f32 %v1474_v4, %v456_v46 }
 0x5f1   :  { %789 = vmax.xlane.f32.xlu0 %v788_v6 }
 0x5f5   :  { %v786_v7 = vpop.f32.mrf.mxu1 }
 0x601   :  { %800 = vrot.lane.b32.xlu2 %v710_v55, %s1273_s4 }
 0x605   :  { %711 = vrot.lane.b32.xlu0 %v710_v55, %s1274_s6 }
 0x60d   :  { %874 = vrot.lane.b32.xlu0 %v710_v55, %s1275_s8 }
 0x653   :  { %v608_v12 = vpop.f32.mrf.mxu2 }
 0x654   :  { %v612_v15 = vadd.f32 %v608_v12, %v535_v9  ;;  %v698_v16 = vpop.xlane.xlu1 %697 }
 0x655   :  { %v699_v17 = vsub.f32 %v693_v57, %v698_v16 }
 0x656   :  { %v614_v18 = vadd.f32 %v613_v14, %v612_v15 }
 0x657   :  { %v700_v19 = vmul.f32 1.442695, %v699_v17 }
 0x658   :  { %615 = vst.msk [vmem:[#allocation3] sm:$0xff] %vm165_vm0, %v614_v18 }
 0x659   :  { %1048 = vpow2.f32 %v700_v19 }
 0x65b   :  { %v610_v0 = vpop.f32.mrf.mxu2 }
 0x65c   :  { %v864_v22 = vpop.xlane.xlu2 %863 }
 0x65d   :  { %v865_v25 = vsub.f32 %v859_v62, %v864_v22 }
 0x65f   :  { %v1049_v21 = vpop.eup %1048  ;;  %v919_v61 = vld [vmem:[#allocation3] sm:$0xff]  ;;  %v866_v27 = vmul.f32 1.442695, %v865_v25 }
 0x660   :  { %v702_v4 = vsel %vm163_vm1, %v1049_v21, 0.0  ;;  %v925_v13 = vadd.f32 %v1528_v20, %v919_v61 }
 0x661   :  { %703 = vadd.xlane.f32.xlu1 %v702_v4 }
 0x662   :  { %927 = vst.msk [vmem:[#allocation16] sm:$0xff] %vm165_vm0, %v925_v13 }
 0x664   :  { %v790_v23 = vpop.xlane.xlu0 %789  ;;  %v801_v31 = vpop.permute.xlu2 %800 }
 0x665   :  { %v791_v24 = vsub.f32 %v785_v3, %v790_v23  ;;  %v806_v35 = vsel %vm337_vm3, %v801_v31, 0 }
 0x667   :  { %v792_v26 = vmul.f32 1.442695, %v791_v24 }
 0x669   :  { %1050 = vpow2.f32 %v792_v26 }
 0x66a   :  { %1052 = vpow2.f32 %v866_v27 }
 0x66f   :  { %v1051_v28 = vpop.eup %1050 }
 0x670   :  { %v794_v29 = vsel %vm163_vm1, %v1051_v28, 0.0  ;;  %v1053_v30 = vpop.eup %1052 }
 0x671   :  { %795 = vadd.xlane.f32.xlu1 %v794_v29  ;;  %v868_v34 = vsel %vm163_vm1, %v1053_v30, 0.0 }
 0x677   :  { %v712_v32 = vpop.permute.xlu0 %711 }
 0x678   :  { %v717_v33 = vsel %vm337_vm3, %v712_v32, 0 }
 0x679   :  { %726 = vmatpush.bf16.msra.mxu2 %v717_v33  ;;  %869 = vadd.xlane.f32.xlu1 %v868_v34 }
 0x67d   :  { %815 = vmatpush.bf16.msrb.mxu2 %v806_v35 }
 0x67f   :  { %v875_v36 = vpop.permute.xlu0 %874 }
 0x680   :  { %v880_v37 = vsel %vm337_vm3, %v875_v36, 0 }
 0x681   :  { %889 = vmatpush.bf16.msra.mxu1 %v880_v37 }
 0x6d4   :  { %v704_v39 = vpop.xlane.xlu1 %703 }
 0x6d5   :  { %1054 = vrcp.f32 %v704_v39 }
 0x6db   :  { %v1055_v10 = vpop.eup %1054 }
 0x6dc   :  { %v706_v41 = vmul.f32 %v1055_v10, %v1049_v21 }
 0x6de   :  { %v707_v42 = vpack.c.bf16 %v706_v41, %v706_v41 }
 0x6e0   :  { %993 = vmatmul.msk.bf16.vlgmr.msra.gmra.mxu2 %vm163_vm1, %v707_v42 }
 0x6e1   :  { %906 = vmatpush.bf16.msra.mxu2 %v1503_v49 }
 0x6e4   :  { %v796_v43 = vpop.xlane.xlu1 %795 }
 0x6e5   :  { %1056 = vrcp.f32 %v796_v43 }
 0x6eb   :  { %v1057_v11 = vpop.eup %1056 }
 0x6ec   :  { %v798_v44 = vmul.f32 %v1057_v11, %v1051_v28  ;;  %v870_v40 = vpop.xlane.xlu1 %869 }
 0x6ed   :  { %1058 = vrcp.f32 %v870_v40 }
 0x6ee   :  { %v799_v45 = vpack.c.bf16 %v798_v44, %v798_v44 }
 0x6f0   :  { %997 = vmatmul.msk.bf16.vlgmr.msrb.gmra.mxu2 %vm163_vm1, %v799_v45 }
 0x6f3   :  { %v1059_v38 = vpop.eup %1058 }
 0x6f4   :  { %v872_v47 = vmul.f32 %v1059_v38, %v1053_v30 }
 0x6f6   :  { %v873_v48 = vpack.c.bf16 %v872_v47, %v872_v47 }
 0x6f8   :  { %1000 = vmatmul.msk.bf16.vlgmr.msra.gmra.mxu1 %vm163_vm1, %v873_v48 }
 0x763   :  { %v728_v50 = vpop.f32.mrf.mxu2 }
 0x764   :  { %v732_v51 = vpack.c.bf16 %v728_v50, %v728_v50 }
 0x766   :  { %994 = vmatmul.msk.bf16.vlgmr.msra.gmra.mxu3 %vm163_vm1, %v732_v51 }
 0x76b   :  { %v730_v53 = vpop.f32.mrf.mxu2 }
 0x773   :  { %v817_v49 = vpop.f32.mrf.mxu2 }
 0x774   :  { %v821_v54 = vpack.c.bf16 %v817_v49, %v817_v49 }
 0x775   :  { %v891_v56 = vpop.f32.mrf.mxu1 }
 0x776   :  { %v895_v57 = vpack.c.bf16 %v891_v56, %v891_v56  ;;  %998 = vmatmul.msk.bf16.vlgmr.msrb.gmra.mxu3 %vm163_vm1, %v821_v54 }
 0x778   :  { %1001 = vmatmul.msk.bf16.vlgmr.msra.gmra.mxu2 %vm163_vm1, %v895_v57 }
 0x77b   :  { %v819_v58 = vpop.f32.mrf.mxu2 }
 0x77d   :  { %v893_v59 = vpop.f32.mrf.mxu1 }
 0x7e9   :  { %v745_v60 = vpop.f32.mrf.mxu3 }
 0x7ea   :  { %v762_v63 = vadd.f32 %v1507_v52, %v745_v60 }
 0x7f1   :  { %v747_v62 = vpop.f32.mrf.mxu3 }
 0x7f9   :  { %v834_v1 = vpop.f32.mrf.mxu3 }
 0x7fa   :  { %v838_v2 = vadd.f32 %v834_v1, %v762_v63 }
 0x7fb   :  { %v908_v3 = vpop.f32.mrf.mxu2 }
 0x7fc   :  { %v912_v6 = vadd.f32 %v908_v3, %v838_v2 }
 0x7fe   :  { %v914_v7 = vadd.f32 %v913_v5, %v912_v6 }
 0x800   :  { %915 = vst.msk [vmem:[#allocation3 + $0x8] sm:$0xff] %vm165_vm0, %v914_v7 }
 0x801   :  { %v836_v8 = vpop.f32.mrf.mxu3 }
 0x803   :  { %v910_v55 = vpop.f32.mrf.mxu2 }
 0x807   :  { %v920_v46 = vld [vmem:[#allocation3 + $0x8] sm:$0xff] }
 0x808   :  { %v926_v9 = vadd.f32 %v1528_v20, %v920_v46 }
 0x80a   :  { %928 = vst.msk [vmem:[#allocation16 + $0x8] sm:$0xff] %vm165_vm0, %v926_v9 }
 0x80b   :  { %941 = dma.vmem_to_hbm [thread:$0]  %s934_s19, 256, %s936_s22, [#allocation6], %s1263_s25, %s1263_s25, %s1264_s26  }
 0x80c   :  { %1260 = dma.done.wait [#allocation6], 256  }
 0x80d   :  { %1261 = vsyncadd [#allocation6], 4294967040 }
 0x80e   :  { %946 = vsyncpa [#allocation5], 1 }
 0x80f   :  { %947 = vsyncpa [#allocation8], 1 }
 0x810   :  { %948 = vsyncpa [#allocation11], 1 }
 0x811   :  { %949 = vsyncpa [#allocation14], 1 }
 0x812   :  { %950 = vsyncpa [#allocation6], 1 }

</bundles_post_ra>
